<compile_context>
chip_gen: v5e
topology: v5e:2x2
jax: 0.10.0
libtpu: 0.0.40
codegen_flags: <defaults>
</compile_context>

<pallas_src>
import math
import functools

import jax
import jax.numpy as jnp
from jax import lax
from jax.experimental import pallas as pl
from jax.experimental.pallas import tpu as pltpu


# ----------------------------------------------------------------------------------
# Kernel
# ----------------------------------------------------------------------------------
def _causal_attn_kernel(x_ref, wqkv_t_ref, bqkv_ref, wo_t_ref, bo_ref, o_ref, ctx_ref,
                        *, seq_len, embed_dim, n_heads, block_b, matmul_dtype):
    T, E, H, Bb = seq_len, embed_dim, n_heads, block_b
    D = E // H
    M = Bb * T                                     # flattened rows this grid step

    x = x_ref[...].reshape(M, E).astype(matmul_dtype)     # merge leading dims (no lane move)
    wqkv_t = wqkv_t_ref[...]                               # (E, 3E)  (in, out) layout
    wo_t = wo_t_ref[...]                                   # (E, E)   (in, out) layout

    # ---- fused QKV projection: x @ Wqkv^T + b, f32 accumulation ----
    qkv = jnp.dot(x, wqkv_t, preferred_element_type=jnp.float32) + bqkv_ref[...]  # (M, 3E)

    # Fold 1/sqrt(D) into q once (Bb*T*E work instead of H * Bb*T*T score scalings).
    inv_sqrt_d = jnp.float32(1.0 / math.sqrt(D))
    q_all = qkv[:, :E] * inv_sqrt_d

    # Causal mask as additive bias (finite sentinel); broadcast hoisted out of the loop.
    rows = lax.broadcasted_iota(jnp.int32, (T, T), 0)
    cols = lax.broadcasted_iota(jnp.int32, (T, T), 1)
    mask2 = jnp.where(rows >= cols, 0.0, -1e30).astype(jnp.float32)
    mask3 = jnp.broadcast_to(mask2[None], (Bb, T, T))

    # ---- per-head attention; each head's context written to VMEM scratch at h*D ----
    for h in range(H):
        qh = q_all[:, h * D:(h + 1) * D].astype(matmul_dtype).reshape(Bb, T, D)
        kh = qkv[:, E + h * D:E + (h + 1) * D].astype(matmul_dtype).reshape(Bb, T, D)
        vh = qkv[:, 2 * E + h * D:2 * E + (h + 1) * D].astype(matmul_dtype).reshape(Bb, T, D)

        # scores[b, q, k] = sum_d qh[b,q,d] * kh[b,k,d]   (no explicit k transpose)
        scores = jnp.einsum('bqd,bkd->bqk', qh, kh,
                            preferred_element_type=jnp.float32) + mask3

        m = jnp.max(scores, axis=-1, keepdims=True)
        p = jnp.exp(scores - m)
        denom = jnp.sum(p, axis=-1, keepdims=True)                       # (Bb, T, 1)

        ctx = jnp.einsum('bqk,bkd->bqd', p.astype(matmul_dtype), vh,
                         preferred_element_type=jnp.float32)             # (Bb, T, D)
        # Normalize the (T, D) context, not the (T, T) probabilities (EUP reciprocal).
        ctx = ctx * pl.reciprocal(denom, approx=True)

        ctx_ref[:, h * D:(h + 1) * D] = ctx.reshape(M, D)

    # ---- single output projection with K = E (MRB-friendly accumulation on v7x) ----
    out = jnp.dot(ctx_ref[...].astype(matmul_dtype), wo_t,
                  preferred_element_type=jnp.float32) + bo_ref[...]      # (M, E)
    o_ref[...] = out.reshape(Bb, T, E).astype(o_ref.dtype)


# ----------------------------------------------------------------------------------
# Wrapper
# ----------------------------------------------------------------------------------
def _vmem_capacity_bytes():
    """Physical VMEM per core (v5e/v6e: 128 MiB, v7x: 64 MiB); conservative fallback."""
    try:
        info = pltpu.get_tpu_info()
        cap = getattr(info, "vmem_capacity_bytes", None)
        if cap:
            return int(cap)
    except Exception:
        pass
    return 64 * 1024 * 1024


def _vmem_estimate_bytes(block_b, T, E, x_itemsize, w_itemsize):
    M = block_b * T
    io = 2 * (block_b * T * E * x_itemsize) * 2        # x + out blocks, double-buffered
    weights = (3 * E * E + E * E) * w_itemsize + (4 * E) * 4
    activ = M * 3 * E * 4 + 2 * M * E * 4              # qkv + q_all + ctx scratch
    scores = 3 * block_b * T * T * 4                   # scores + p + mask broadcast
    return int(1.5 * (io + weights + activ + scores))  # headroom for temps/spills


def _pick_batch_block(B, T, E, x_itemsize, w_itemsize, rows_target, vmem_budget):
    """Largest divisor of B fitting rows_target / VMEM; keep grid >= 2 when B >= 2 so
    the 'parallel' axis can be sharded across v7x's two TensorCores."""
    best = 1
    for cand in range(1, B + 1):
        if B % cand:
            continue
        if B >= 2 and cand > B // 2:
            continue
        if cand * T > max(rows_target, T):
            continue
        if _vmem_estimate_bytes(cand, T, E, x_itemsize, w_itemsize) > vmem_budget:
            continue
        best = cand
    return best


def causal_attention(x, w_qkv, b_qkv, w_o, b_o, *, n_heads):
    """x: (B, T, E). Weights in PyTorch Linear convention: w_qkv (3E, E), w_o (E, E)."""
    B, T, E = x.shape
    assert E % n_heads == 0

    # bf16 MXU operands (f32 accumulation) only for realistic embedding widths.
    matmul_dtype = jnp.bfloat16 if E >= 256 else jnp.float32
    w_itemsize = jnp.dtype(matmul_dtype).itemsize
    x_itemsize = jnp.dtype(x.dtype).itemsize

    # Per-generation VMEM budget / tile targets.
    cap = _vmem_capacity_bytes()
    vmem_limit = max(32 * 1024 * 1024, min(int(cap * 0.75), 100 * 1024 * 1024))
    rows_target = 1024 if cap >= 96 * 1024 * 1024 else 512

    Bblk = _pick_batch_block(B, T, E, x_itemsize, w_itemsize,
                             rows_target, int(vmem_limit * 0.6))
    grid = (B // Bblk,)

    # One-time wrapper-side transpose to (in, out) layout: every in-kernel matmul is a
    # plain contraction, so no per-grid-step relayout of grid-invariant weights.
    w_qkv_t = w_qkv.T.astype(matmul_dtype)               # (E, 3E)
    w_o_t = w_o.T.astype(matmul_dtype)                   # (E, E)
    bqkv_2d = b_qkv.reshape(1, 3 * E).astype(jnp.float32)
    bo_2d = b_o.reshape(1, E).astype(jnp.float32)

    kernel = functools.partial(
        _causal_attn_kernel, seq_len=T, embed_dim=E, n_heads=n_heads,
        block_b=Bblk, matmul_dtype=matmul_dtype)

    def build(single_buffer_weights):
        pm = dict(pipeline_mode=pl.Buffered(1)) if single_buffer_weights else {}
        in_specs = [
            pl.BlockSpec((Bblk, T, E), lambda b: (b, 0, 0)),          # x block
            pl.BlockSpec((E, 3 * E), lambda b: (0, 0), **pm),         # W_qkv^T (invariant)
            pl.BlockSpec((1, 3 * E), lambda b: (0, 0), **pm),         # b_qkv  (invariant)
            pl.BlockSpec((E, E), lambda b: (0, 0), **pm),             # W_o^T  (invariant)
            pl.BlockSpec((1, E), lambda b: (0, 0), **pm),             # b_o    (invariant)
        ]
        return pl.pallas_call(
            kernel,
            out_shape=jax.ShapeDtypeStruct((B, T, E), x.dtype),
            grid_spec=pltpu.PrefetchScalarGridSpec(
                num_scalar_prefetch=0,
                grid=grid,
                in_specs=in_specs,
                out_specs=pl.BlockSpec((Bblk, T, E), lambda b: (b, 0, 0)),
                scratch_shapes=[pltpu.VMEM((Bblk * T, E), jnp.float32)],  # ctx (M, E)
            ),
            compiler_params=pltpu.CompilerParams(
                dimension_semantics=("parallel",),
                vmem_limit_bytes=vmem_limit,
            ),
        )

    args = (x, w_qkv_t, bqkv_2d, w_o_t, bo_2d)
    try:
        return build(True)(*args)
    except Exception:
        # Fallback if this JAX build rejects Buffered(1) for grid-invariant inputs.
        return build(False)(*args)


# ----------------------------------------------------------------------------------
# Pure-JAX reference (mirrors the PyTorch forward, eval mode)
# ----------------------------------------------------------------------------------
def causal_attention_ref(x, w_qkv, b_qkv, w_o, b_o, *, n_heads):
    B, T, E = x.shape
    D = E // n_heads
    qkv = jnp.einsum('bte,oe->bto', x, w_qkv) + b_qkv     # (B, T, 3E)
    q, k, v = jnp.split(qkv, 3, axis=-1)

    def split_heads(z):
        return z.reshape(B, T, n_heads, D).transpose(0, 2, 1, 3)  # (B, H, T, D)

    q, k, v = split_heads(q), split_heads(k), split_heads(v)
    attn = jnp.einsum('bhtd,bhsd->bhts', q, k) / math.sqrt(D)
    mask = jnp.tril(jnp.ones((T, T), dtype=bool))
    attn = jnp.where(mask[None, None], attn, -jnp.inf)
    attn = jax.nn.softmax(attn, axis=-1)
    y = jnp.einsum('bhts,bhsd->bhtd', attn, v)
    y = y.transpose(0, 2, 1, 3).reshape(B, T, E)
    return jnp.einsum('bte,oe->bto', y, w_o) + b_o


if __name__ == "__main__":
    # Small config consistent with the module: embed_dim=32, n_heads=4,
    # block_size >= T, dropout=0.0 (eval).
    B, T, E, H = 2, 8, 32, 4

    key = jax.random.PRNGKey(0)
    kx, k1, k2, k3, k4 = jax.random.split(key, 5)

    x = jax.random.normal(kx, (B, T, E), dtype=jnp.float32)

    # Deterministic parameter init (uniform, PyTorch Linear-like scale).
    bound = 1.0 / math.sqrt(E)
    w_qkv = jax.random.uniform(k1, (3 * E, E), jnp.float32, -bound, bound)
    b_qkv = jax.random.uniform(k2, (3 * E,), jnp.float32, -bound, bound)
    w_o = jax.random.uniform(k3, (E, E), jnp.float32, -bound, bound)
    b_o = jax.random.uniform(k4, (E,), jnp.float32, -bound, bound)

    out = causal_attention(x, w_qkv, b_qkv, w_o, b_o, n_heads=H)
    out = jax.block_until_ready(out)

    ref = causal_attention_ref(x, w_qkv, b_qkv, w_o, b_o, n_heads=H)
    assert out.shape == (B, T, E)
    # Tolerance relaxed slightly (approx EUP reciprocal in the softmax normalization).
    assert jnp.allclose(out, ref, atol=2e-3, rtol=2e-3), \
        f"max abs err {jnp.max(jnp.abs(out - ref))}"

    print("KERNEL_OK")
</pallas_src>

<mosaic_0001>
module attributes {stable_mosaic.version = 11 : i64} {
  func.func @_causal_attn_kernel(%arg0: i32, %arg1: memref<1x8x32xf32, #tpu.memory_space<vmem>>, %arg2: memref<32x96xf32, #tpu.memory_space<vmem>>, %arg3: memref<1x96xf32, #tpu.memory_space<vmem>>, %arg4: memref<32x32xf32, #tpu.memory_space<vmem>>, %arg5: memref<1x32xf32, #tpu.memory_space<vmem>>, %arg6: memref<1x8x32xf32, #tpu.memory_space<vmem>>, %arg7: memref<8x32xf32, #tpu.memory_space<vmem>>) attributes {dimension_semantics = [#tpu.dimension_semantics<parallel>], iteration_bounds = array<i64: 2>, scalar_prefetch = 0 : i64, scratch_operands = 1 : i64, tpu.core_type = #tpu.core_type<tc>, window_params = [{transform_indices = @transform_0, window_bounds = array<i64: 1, 8, 32>}, {pipeline_mode = #tpu.pipeline_mode<synchronous>, transform_indices = @transform_1, window_bounds = array<i64: 32, 96>}, {pipeline_mode = #tpu.pipeline_mode<synchronous>, transform_indices = @transform_2, window_bounds = array<i64: 1, 96>}, {pipeline_mode = #tpu.pipeline_mode<synchronous>, transform_indices = @transform_3, window_bounds = array<i64: 32, 32>}, {pipeline_mode = #tpu.pipeline_mode<synchronous>, transform_indices = @transform_4, window_bounds = array<i64: 1, 32>}, {transform_indices = @transform_5, window_bounds = array<i64: 1, 8, 32>}]} {
    %c0 = arith.constant 0 : index
    %c0_0 = arith.constant 0 : index
    %c0_1 = arith.constant 0 : index
    %0 = vector.load %arg1[%c0, %c0_0, %c0_1] : memref<1x8x32xf32, #tpu.memory_space<vmem>>, vector<1x8x32xf32>
    %1 = vector.shape_cast %0 : vector<1x8x32xf32> to vector<8x32xf32>
    %c0_2 = arith.constant 0 : index
    %c0_3 = arith.constant 0 : index
    %2 = vector.load %arg2[%c0_2, %c0_3] : memref<32x96xf32, #tpu.memory_space<vmem>>, vector<32x96xf32>
    %c0_4 = arith.constant 0 : index
    %c0_5 = arith.constant 0 : index
    %3 = vector.load %arg4[%c0_4, %c0_5] : memref<32x32xf32, #tpu.memory_space<vmem>>, vector<32x32xf32>
    %cst = arith.constant dense<0.000000e+00> : vector<8x96xf32>
    %4 = tpu.matmul %1, %2, %cst {dimension_numbers = #tpu.dot_dimension_numbers<[1], [0], [0], [1], [0, 0, 1, 1], [], []>} : vector<8x32xf32>, vector<32x96xf32>, vector<8x96xf32> -> vector<8x96xf32>
    %c0_6 = arith.constant 0 : index
    %c0_7 = arith.constant 0 : index
    %5 = vector.load %arg3[%c0_6, %c0_7] : memref<1x96xf32, #tpu.memory_space<vmem>>, vector<1x96xf32>
    %6 = vector.broadcast %5 : vector<1x96xf32> to vector<8x96xf32>
    %7 = arith.addf %4, %6 : vector<8x96xf32>
    %8 = vector.extract_strided_slice %7 {offsets = [0, 0], sizes = [8, 32], strides = [1, 1]} : vector<8x96xf32> to vector<8x32xf32>
    %cst_8 = arith.constant 0.353553385 : f32
    %9 = vector.broadcast %cst_8 : f32 to vector<8x32xf32>
    %10 = arith.mulf %8, %9 : vector<8x32xf32>
    %11 = tpu.iota {dimensions = array<i32: 0>} : vector<8x8xi32>
    %12 = tpu.iota {dimensions = array<i32: 1>} : vector<8x8xi32>
    %13 = arith.cmpi sge, %11, %12 : vector<8x8xi32>
    %cst_9 = arith.constant 0.000000e+00 : f32
    %cst_10 = arith.constant -1.000000e+30 : f32
    %14 = vector.broadcast %cst_9 : f32 to vector<8x8xf32>
    %15 = vector.broadcast %cst_10 : f32 to vector<8x8xf32>
    %16 = arith.select %13, %14, %15 : vector<8x8xi1>, vector<8x8xf32>
    %17 = vector.shape_cast %16 : vector<8x8xf32> to vector<1x8x8xf32>
    %18 = vector.extract_strided_slice %10 {offsets = [0, 0], sizes = [8, 8], strides = [1, 1]} : vector<8x32xf32> to vector<8x8xf32>
    %19 = vector.shape_cast %18 : vector<8x8xf32> to vector<1x8x8xf32>
    %20 = vector.extract_strided_slice %7 {offsets = [0, 32], sizes = [8, 8], strides = [1, 1]} : vector<8x96xf32> to vector<8x8xf32>
    %21 = vector.shape_cast %20 : vector<8x8xf32> to vector<1x8x8xf32>
    %22 = vector.extract_strided_slice %7 {offsets = [0, 64], sizes = [8, 8], strides = [1, 1]} : vector<8x96xf32> to vector<8x8xf32>
    %23 = vector.shape_cast %22 : vector<8x8xf32> to vector<1x8x8xf32>
    "tpu.trace_start"() <{level = 10 : i32, message = "bqd,bkd->bqk"}> : () -> ()
    %cst_11 = arith.constant dense<0.000000e+00> : vector<1x8x8xf32>
    %24 = tpu.matmul %19, %21, %cst_11 {dimension_numbers = #tpu.dot_dimension_numbers<[2], [2], [1], [1], [0, 0, 0, 1, 1, 1], [0], [0]>} : vector<1x8x8xf32>, vector<1x8x8xf32>, vector<1x8x8xf32> -> vector<1x8x8xf32>
    "tpu.trace_stop"() : () -> ()
    %25 = arith.addf %24, %17 : vector<1x8x8xf32>
    %cst_12 = arith.constant dense<0xFF800000> : vector<1x8xf32>
    %26 = vector.multi_reduction <maximumf>, %25, %cst_12 [2] : vector<1x8x8xf32> to vector<1x8xf32>
    %27 = vector.shape_cast %26 : vector<1x8xf32> to vector<1x8x1xf32>
    %28 = vector.broadcast %27 : vector<1x8x1xf32> to vector<1x8x8xf32>
    %29 = arith.subf %25, %28 : vector<1x8x8xf32>
    %30 = math.exp %29 : vector<1x8x8xf32>
    %cst_13 = arith.constant dense<0.000000e+00> : vector<1x8xf32>
    %31 = vector.multi_reduction <add>, %30, %cst_13 [2] : vector<1x8x8xf32> to vector<1x8xf32>
    %32 = vector.shape_cast %31 : vector<1x8xf32> to vector<1x8x1xf32>
    "tpu.trace_start"() <{level = 10 : i32, message = "bqk,bkd->bqd"}> : () -> ()
    %cst_14 = arith.constant dense<0.000000e+00> : vector<1x8x8xf32>
    %33 = tpu.matmul %30, %23, %cst_14 {dimension_numbers = #tpu.dot_dimension_numbers<[2], [1], [1], [2], [0, 0, 0, 1, 1, 2], [0], [0]>} : vector<1x8x8xf32>, vector<1x8x8xf32>, vector<1x8x8xf32> -> vector<1x8x8xf32>
    "tpu.trace_stop"() : () -> ()
    %34 = tpu.reciprocal %32 {approx = true} : vector<1x8x1xf32> -> vector<1x8x1xf32>
    %35 = vector.broadcast %34 : vector<1x8x1xf32> to vector<1x8x8xf32>
    %36 = arith.mulf %33, %35 : vector<1x8x8xf32>
    %37 = vector.shape_cast %36 : vector<1x8x8xf32> to vector<8x8xf32>
    %c0_15 = arith.constant 0 : index
    %c0_16 = arith.constant 0 : index
    %38 = vector.load %arg7[%c0_15, %c0_16] : memref<8x32xf32, #tpu.memory_space<vmem>>, vector<8x8xf32>
    tpu.vector_store %arg7[%c0_15, %c0_16], %37 {strides = array<i32>} : memref<8x32xf32, #tpu.memory_space<vmem>>, vector<8x8xf32>,
    %39 = vector.extract_strided_slice %10 {offsets = [0, 8], sizes = [8, 8], strides = [1, 1]} : vector<8x32xf32> to vector<8x8xf32>
    %40 = vector.shape_cast %39 : vector<8x8xf32> to vector<1x8x8xf32>
    %41 = vector.extract_strided_slice %7 {offsets = [0, 40], sizes = [8, 8], strides = [1, 1]} : vector<8x96xf32> to vector<8x8xf32>
    %42 = vector.shape_cast %41 : vector<8x8xf32> to vector<1x8x8xf32>
    %43 = vector.extract_strided_slice %7 {offsets = [0, 72], sizes = [8, 8], strides = [1, 1]} : vector<8x96xf32> to vector<8x8xf32>
    %44 = vector.shape_cast %43 : vector<8x8xf32> to vector<1x8x8xf32>
    "tpu.trace_start"() <{level = 10 : i32, message = "bqd,bkd->bqk"}> : () -> ()
    %cst_17 = arith.constant dense<0.000000e+00> : vector<1x8x8xf32>
    %45 = tpu.matmul %40, %42, %cst_17 {dimension_numbers = #tpu.dot_dimension_numbers<[2], [2], [1], [1], [0, 0, 0, 1, 1, 1], [0], [0]>} : vector<1x8x8xf32>, vector<1x8x8xf32>, vector<1x8x8xf32> -> vector<1x8x8xf32>
    "tpu.trace_stop"() : () -> ()
    %46 = arith.addf %45, %17 : vector<1x8x8xf32>
    %cst_18 = arith.constant dense<0xFF800000> : vector<1x8xf32>
    %47 = vector.multi_reduction <maximumf>, %46, %cst_18 [2] : vector<1x8x8xf32> to vector<1x8xf32>
    %48 = vector.shape_cast %47 : vector<1x8xf32> to vector<1x8x1xf32>
    %49 = vector.broadcast %48 : vector<1x8x1xf32> to vector<1x8x8xf32>
    %50 = arith.subf %46, %49 : vector<1x8x8xf32>
    %51 = math.exp %50 : vector<1x8x8xf32>
    %cst_19 = arith.constant dense<0.000000e+00> : vector<1x8xf32>
    %52 = vector.multi_reduction <add>, %51, %cst_19 [2] : vector<1x8x8xf32> to vector<1x8xf32>
    %53 = vector.shape_cast %52 : vector<1x8xf32> to vector<1x8x1xf32>
    "tpu.trace_start"() <{level = 10 : i32, message = "bqk,bkd->bqd"}> : () -> ()
    %cst_20 = arith.constant dense<0.000000e+00> : vector<1x8x8xf32>
    %54 = tpu.matmul %51, %44, %cst_20 {dimension_numbers = #tpu.dot_dimension_numbers<[2], [1], [1], [2], [0, 0, 0, 1, 1, 2], [0], [0]>} : vector<1x8x8xf32>, vector<1x8x8xf32>, vector<1x8x8xf32> -> vector<1x8x8xf32>
    "tpu.trace_stop"() : () -> ()
    %55 = tpu.reciprocal %53 {approx = true} : vector<1x8x1xf32> -> vector<1x8x1xf32>
    %56 = vector.broadcast %55 : vector<1x8x1xf32> to vector<1x8x8xf32>
    %57 = arith.mulf %54, %56 : vector<1x8x8xf32>
    %58 = vector.shape_cast %57 : vector<1x8x8xf32> to vector<8x8xf32>
    %c0_21 = arith.constant 0 : index
    %c8 = arith.constant 8 : index
    %59 = vector.load %arg7[%c0_21, %c8] : memref<8x32xf32, #tpu.memory_space<vmem>>, vector<8x8xf32>
    tpu.vector_store %arg7[%c0_21, %c8], %58 {strides = array<i32>} : memref<8x32xf32, #tpu.memory_space<vmem>>, vector<8x8xf32>,
    %60 = vector.extract_strided_slice %10 {offsets = [0, 16], sizes = [8, 8], strides = [1, 1]} : vector<8x32xf32> to vector<8x8xf32>
    %61 = vector.shape_cast %60 : vector<8x8xf32> to vector<1x8x8xf32>
    %62 = vector.extract_strided_slice %7 {offsets = [0, 48], sizes = [8, 8], strides = [1, 1]} : vector<8x96xf32> to vector<8x8xf32>
    %63 = vector.shape_cast %62 : vector<8x8xf32> to vector<1x8x8xf32>
    %64 = vector.extract_strided_slice %7 {offsets = [0, 80], sizes = [8, 8], strides = [1, 1]} : vector<8x96xf32> to vector<8x8xf32>
    %65 = vector.shape_cast %64 : vector<8x8xf32> to vector<1x8x8xf32>
    "tpu.trace_start"() <{level = 10 : i32, message = "bqd,bkd->bqk"}> : () -> ()
    %cst_22 = arith.constant dense<0.000000e+00> : vector<1x8x8xf32>
    %66 = tpu.matmul %61, %63, %cst_22 {dimension_numbers = #tpu.dot_dimension_numbers<[2], [2], [1], [1], [0, 0, 0, 1, 1, 1], [0], [0]>} : vector<1x8x8xf32>, vector<1x8x8xf32>, vector<1x8x8xf32> -> vector<1x8x8xf32>
    "tpu.trace_stop"() : () -> ()
    %67 = arith.addf %66, %17 : vector<1x8x8xf32>
    %cst_23 = arith.constant dense<0xFF800000> : vector<1x8xf32>
    %68 = vector.multi_reduction <maximumf>, %67, %cst_23 [2] : vector<1x8x8xf32> to vector<1x8xf32>
    %69 = vector.shape_cast %68 : vector<1x8xf32> to vector<1x8x1xf32>
    %70 = vector.broadcast %69 : vector<1x8x1xf32> to vector<1x8x8xf32>
    %71 = arith.subf %67, %70 : vector<1x8x8xf32>
    %72 = math.exp %71 : vector<1x8x8xf32>
    %cst_24 = arith.constant dense<0.000000e+00> : vector<1x8xf32>
    %73 = vector.multi_reduction <add>, %72, %cst_24 [2] : vector<1x8x8xf32> to vector<1x8xf32>
    %74 = vector.shape_cast %73 : vector<1x8xf32> to vector<1x8x1xf32>
    "tpu.trace_start"() <{level = 10 : i32, message = "bqk,bkd->bqd"}> : () -> ()
    %cst_25 = arith.constant dense<0.000000e+00> : vector<1x8x8xf32>
    %75 = tpu.matmul %72, %65, %cst_25 {dimension_numbers = #tpu.dot_dimension_numbers<[2], [1], [1], [2], [0, 0, 0, 1, 1, 2], [0], [0]>} : vector<1x8x8xf32>, vector<1x8x8xf32>, vector<1x8x8xf32> -> vector<1x8x8xf32>
    "tpu.trace_stop"() : () -> ()
    %76 = tpu.reciprocal %74 {approx = true} : vector<1x8x1xf32> -> vector<1x8x1xf32>
    %77 = vector.broadcast %76 : vector<1x8x1xf32> to vector<1x8x8xf32>
    %78 = arith.mulf %75, %77 : vector<1x8x8xf32>
    %79 = vector.shape_cast %78 : vector<1x8x8xf32> to vector<8x8xf32>
    %c0_26 = arith.constant 0 : index
    %c16 = arith.constant 16 : index
    %80 = vector.load %arg7[%c0_26, %c16] : memref<8x32xf32, #tpu.memory_space<vmem>>, vector<8x8xf32>
    tpu.vector_store %arg7[%c0_26, %c16], %79 {strides = array<i32>} : memref<8x32xf32, #tpu.memory_space<vmem>>, vector<8x8xf32>,
    %81 = vector.extract_strided_slice %10 {offsets = [0, 24], sizes = [8, 8], strides = [1, 1]} : vector<8x32xf32> to vector<8x8xf32>
    %82 = vector.shape_cast %81 : vector<8x8xf32> to vector<1x8x8xf32>
    %83 = vector.extract_strided_slice %7 {offsets = [0, 56], sizes = [8, 8], strides = [1, 1]} : vector<8x96xf32> to vector<8x8xf32>
    %84 = vector.shape_cast %83 : vector<8x8xf32> to vector<1x8x8xf32>
    %85 = vector.extract_strided_slice %7 {offsets = [0, 88], sizes = [8, 8], strides = [1, 1]} : vector<8x96xf32> to vector<8x8xf32>
    %86 = vector.shape_cast %85 : vector<8x8xf32> to vector<1x8x8xf32>
    "tpu.trace_start"() <{level = 10 : i32, message = "bqd,bkd->bqk"}> : () -> ()
    %cst_27 = arith.constant dense<0.000000e+00> : vector<1x8x8xf32>
    %87 = tpu.matmul %82, %84, %cst_27 {dimension_numbers = #tpu.dot_dimension_numbers<[2], [2], [1], [1], [0, 0, 0, 1, 1, 1], [0], [0]>} : vector<1x8x8xf32>, vector<1x8x8xf32>, vector<1x8x8xf32> -> vector<1x8x8xf32>
    "tpu.trace_stop"() : () -> ()
    %88 = arith.addf %87, %17 : vector<1x8x8xf32>
    %cst_28 = arith.constant dense<0xFF800000> : vector<1x8xf32>
    %89 = vector.multi_reduction <maximumf>, %88, %cst_28 [2] : vector<1x8x8xf32> to vector<1x8xf32>
    %90 = vector.shape_cast %89 : vector<1x8xf32> to vector<1x8x1xf32>
    %91 = vector.broadcast %90 : vector<1x8x1xf32> to vector<1x8x8xf32>
    %92 = arith.subf %88, %91 : vector<1x8x8xf32>
    %93 = math.exp %92 : vector<1x8x8xf32>
    %cst_29 = arith.constant dense<0.000000e+00> : vector<1x8xf32>
    %94 = vector.multi_reduction <add>, %93, %cst_29 [2] : vector<1x8x8xf32> to vector<1x8xf32>
    %95 = vector.shape_cast %94 : vector<1x8xf32> to vector<1x8x1xf32>
    "tpu.trace_start"() <{level = 10 : i32, message = "bqk,bkd->bqd"}> : () -> ()
    %cst_30 = arith.constant dense<0.000000e+00> : vector<1x8x8xf32>
    %96 = tpu.matmul %93, %86, %cst_30 {dimension_numbers = #tpu.dot_dimension_numbers<[2], [1], [1], [2], [0, 0, 0, 1, 1, 2], [0], [0]>} : vector<1x8x8xf32>, vector<1x8x8xf32>, vector<1x8x8xf32> -> vector<1x8x8xf32>
    "tpu.trace_stop"() : () -> ()
    %97 = tpu.reciprocal %95 {approx = true} : vector<1x8x1xf32> -> vector<1x8x1xf32>
    %98 = vector.broadcast %97 : vector<1x8x1xf32> to vector<1x8x8xf32>
    %99 = arith.mulf %96, %98 : vector<1x8x8xf32>
    %100 = vector.shape_cast %99 : vector<1x8x8xf32> to vector<8x8xf32>
    %c0_31 = arith.constant 0 : index
    %c24 = arith.constant 24 : index
    %101 = vector.load %arg7[%c0_31, %c24] : memref<8x32xf32, #tpu.memory_space<vmem>>, vector<8x8xf32>
    tpu.vector_store %arg7[%c0_31, %c24], %100 {strides = array<i32>} : memref<8x32xf32, #tpu.memory_space<vmem>>, vector<8x8xf32>,
    %c0_32 = arith.constant 0 : index
    %c0_33 = arith.constant 0 : index
    %102 = vector.load %arg7[%c0_32, %c0_33] : memref<8x32xf32, #tpu.memory_space<vmem>>, vector<8x32xf32>
    %cst_34 = arith.constant dense<0.000000e+00> : vector<8x32xf32>
    %103 = tpu.matmul %102, %3, %cst_34 {dimension_numbers = #tpu.dot_dimension_numbers<[1], [0], [0], [1], [0, 0, 1, 1], [], []>} : vector<8x32xf32>, vector<32x32xf32>, vector<8x32xf32> -> vector<8x32xf32>
    %c0_35 = arith.constant 0 : index
    %c0_36 = arith.constant 0 : index
    %104 = vector.load %arg5[%c0_35, %c0_36] : memref<1x32xf32, #tpu.memory_space<vmem>>, vector<1x32xf32>
    %105 = vector.broadcast %104 : vector<1x32xf32> to vector<8x32xf32>
    %106 = arith.addf %103, %105 : vector<8x32xf32>
    %107 = vector.shape_cast %106 : vector<8x32xf32> to vector<1x8x32xf32>
    %c0_37 = arith.constant 0 : index
    %c0_38 = arith.constant 0 : index
    %c0_39 = arith.constant 0 : index
    %108 = vector.load %arg6[%c0_37, %c0_38, %c0_39] : memref<1x8x32xf32, #tpu.memory_space<vmem>>, vector<1x8x32xf32>
    tpu.vector_store %arg6[%c0_37, %c0_38, %c0_39], %107 {strides = array<i32>} : memref<1x8x32xf32, #tpu.memory_space<vmem>>, vector<1x8x32xf32>,
    return
  }
  func.func @transform_0(%arg0: i32) -> (i32, i32, i32) {
    %c0_i32 = arith.constant 0 : i32
    %c0_i32_0 = arith.constant 0 : i32
    %c0_i32_1 = arith.constant 0 : i32
    return %arg0, %c0_i32, %c0_i32_0 : i32, i32, i32
  }
  func.func @transform_1(%arg0: i32) -> (i32, i32) {
    %c0_i32 = arith.constant 0 : i32
    %c0_i32_0 = arith.constant 0 : i32
    %c0_i32_1 = arith.constant 0 : i32
    return %c0_i32, %c0_i32_0 : i32, i32
  }
  func.func @transform_2(%arg0: i32) -> (i32, i32) {
    %c0_i32 = arith.constant 0 : i32
    %c0_i32_0 = arith.constant 0 : i32
    %c0_i32_1 = arith.constant 0 : i32
    return %c0_i32, %c0_i32_0 : i32, i32
  }
  func.func @transform_3(%arg0: i32) -> (i32, i32) {
    %c0_i32 = arith.constant 0 : i32
    %c0_i32_0 = arith.constant 0 : i32
    %c0_i32_1 = arith.constant 0 : i32
    return %c0_i32, %c0_i32_0 : i32, i32
  }
  func.func @transform_4(%arg0: i32) -> (i32, i32) {
    %c0_i32 = arith.constant 0 : i32
    %c0_i32_0 = arith.constant 0 : i32
    %c0_i32_1 = arith.constant 0 : i32
    return %c0_i32, %c0_i32_0 : i32, i32
  }
  func.func @transform_5(%arg0: i32) -> (i32, i32, i32) {
    %c0_i32 = arith.constant 0 : i32
    %c0_i32_0 = arith.constant 0 : i32
    %c0_i32_1 = arith.constant 0 : i32
    return %arg0, %c0_i32, %c0_i32_0 : i32, i32, i32
  }
}

module attributes {stable_mosaic.version = 11 : i64} {
  func.func @_causal_attn_kernel(%arg0: i32, %arg1: memref<1x8x32xf32, #tpu.memory_space<vmem>>, %arg2: memref<32x96xf32, #tpu.memory_space<vmem>>, %arg3: memref<1x96xf32, #tpu.memory_space<vmem>>, %arg4: memref<32x32xf32, #tpu.memory_space<vmem>>, %arg5: memref<1x32xf32, #tpu.memory_space<vmem>>, %arg6: memref<1x8x32xf32, #tpu.memory_space<vmem>>, %arg7: memref<8x32xf32, #tpu.memory_space<vmem>>) attributes {dimension_semantics = [#tpu.dimension_semantics<parallel>], iteration_bounds = array<i64: 2>, scalar_prefetch = 0 : i64, scratch_operands = 1 : i64, tpu.core_type = #tpu.core_type<tc>, window_params = [{transform_indices = @transform_0, window_bounds = array<i64: 1, 8, 32>}, {pipeline_mode = #tpu.pipeline_mode<synchronous>, transform_indices = @transform_1, window_bounds = array<i64: 32, 96>}, {pipeline_mode = #tpu.pipeline_mode<synchronous>, transform_indices = @transform_2, window_bounds = array<i64: 1, 96>}, {pipeline_mode = #tpu.pipeline_mode<synchronous>, transform_indices = @transform_3, window_bounds = array<i64: 32, 32>}, {pipeline_mode = #tpu.pipeline_mode<synchronous>, transform_indices = @transform_4, window_bounds = array<i64: 1, 32>}, {transform_indices = @transform_5, window_bounds = array<i64: 1, 8, 32>}]} {
    %c0 = arith.constant 0 : index
    %c0_0 = arith.constant 0 : index
    %c0_1 = arith.constant 0 : index
    %0 = vector.load %arg1[%c0, %c0_0, %c0_1] : memref<1x8x32xf32, #tpu.memory_space<vmem>>, vector<1x8x32xf32>
    %1 = vector.shape_cast %0 : vector<1x8x32xf32> to vector<8x32xf32>
    %c0_2 = arith.constant 0 : index
    %c0_3 = arith.constant 0 : index
    %2 = vector.load %arg2[%c0_2, %c0_3] : memref<32x96xf32, #tpu.memory_space<vmem>>, vector<32x96xf32>
    %c0_4 = arith.constant 0 : index
    %c0_5 = arith.constant 0 : index
    %3 = vector.load %arg4[%c0_4, %c0_5] : memref<32x32xf32, #tpu.memory_space<vmem>>, vector<32x32xf32>
    %cst = arith.constant dense<0.000000e+00> : vector<8x96xf32>
    %4 = tpu.matmul %1, %2, %cst {dimension_numbers = #tpu.dot_dimension_numbers<[1], [0], [0], [1], [0, 0, 1, 1], [], []>} : vector<8x32xf32>, vector<32x96xf32>, vector<8x96xf32> -> vector<8x96xf32>
    %c0_6 = arith.constant 0 : index
    %c0_7 = arith.constant 0 : index
    %5 = vector.load %arg3[%c0_6, %c0_7] : memref<1x96xf32, #tpu.memory_space<vmem>>, vector<1x96xf32>
    %6 = vector.broadcast %5 : vector<1x96xf32> to vector<8x96xf32>
    %7 = arith.addf %4, %6 : vector<8x96xf32>
    %8 = vector.extract_strided_slice %7 {offsets = [0, 0], sizes = [8, 32], strides = [1, 1]} : vector<8x96xf32> to vector<8x32xf32>
    %cst_8 = arith.constant 0.353553385 : f32
    %9 = vector.broadcast %cst_8 : f32 to vector<8x32xf32>
    %10 = arith.mulf %8, %9 : vector<8x32xf32>
    %11 = tpu.iota {dimensions = array<i32: 0>} : vector<8x8xi32>
    %12 = tpu.iota {dimensions = array<i32: 1>} : vector<8x8xi32>
    %13 = arith.cmpi sge, %11, %12 : vector<8x8xi32>
    %cst_9 = arith.constant 0.000000e+00 : f32
    %cst_10 = arith.constant -1.000000e+30 : f32
    %14 = vector.broadcast %cst_9 : f32 to vector<8x8xf32>
    %15 = vector.broadcast %cst_10 : f32 to vector<8x8xf32>
    %16 = arith.select %13, %14, %15 : vector<8x8xi1>, vector<8x8xf32>
    %17 = vector.shape_cast %16 : vector<8x8xf32> to vector<1x8x8xf32>
    %18 = vector.extract_strided_slice %10 {offsets = [0, 0], sizes = [8, 8], strides = [1, 1]} : vector<8x32xf32> to vector<8x8xf32>
    %19 = vector.shape_cast %18 : vector<8x8xf32> to vector<1x8x8xf32>
    %20 = vector.extract_strided_slice %7 {offsets = [0, 32], sizes = [8, 8], strides = [1, 1]} : vector<8x96xf32> to vector<8x8xf32>
    %21 = vector.shape_cast %20 : vector<8x8xf32> to vector<1x8x8xf32>
    %22 = vector.extract_strided_slice %7 {offsets = [0, 64], sizes = [8, 8], strides = [1, 1]} : vector<8x96xf32> to vector<8x8xf32>
    %23 = vector.shape_cast %22 : vector<8x8xf32> to vector<1x8x8xf32>
    "tpu.trace_start"() <{level = 10 : i32, message = "bqd,bkd->bqk"}> : () -> ()
    %cst_11 = arith.constant dense<0.000000e+00> : vector<1x8x8xf32>
    %24 = tpu.matmul %19, %21, %cst_11 {dimension_numbers = #tpu.dot_dimension_numbers<[2], [2], [1], [1], [0, 0, 0, 1, 1, 1], [0], [0]>} : vector<1x8x8xf32>, vector<1x8x8xf32>, vector<1x8x8xf32> -> vector<1x8x8xf32>
    "tpu.trace_stop"() : () -> ()
    %25 = arith.addf %24, %17 : vector<1x8x8xf32>
    %cst_12 = arith.constant dense<0xFF800000> : vector<1x8xf32>
    %26 = vector.multi_reduction <maximumf>, %25, %cst_12 [2] : vector<1x8x8xf32> to vector<1x8xf32>
    %27 = vector.shape_cast %26 : vector<1x8xf32> to vector<1x8x1xf32>
    %28 = vector.broadcast %27 : vector<1x8x1xf32> to vector<1x8x8xf32>
    %29 = arith.subf %25, %28 : vector<1x8x8xf32>
    %30 = math.exp %29 : vector<1x8x8xf32>
    %cst_13 = arith.constant dense<0.000000e+00> : vector<1x8xf32>
    %31 = vector.multi_reduction <add>, %30, %cst_13 [2] : vector<1x8x8xf32> to vector<1x8xf32>
    %32 = vector.shape_cast %31 : vector<1x8xf32> to vector<1x8x1xf32>
    "tpu.trace_start"() <{level = 10 : i32, message = "bqk,bkd->bqd"}> : () -> ()
    %cst_14 = arith.constant dense<0.000000e+00> : vector<1x8x8xf32>
    %33 = tpu.matmul %30, %23, %cst_14 {dimension_numbers = #tpu.dot_dimension_numbers<[2], [1], [1], [2], [0, 0, 0, 1, 1, 2], [0], [0]>} : vector<1x8x8xf32>, vector<1x8x8xf32>, vector<1x8x8xf32> -> vector<1x8x8xf32>
    "tpu.trace_stop"() : () -> ()
    %34 = tpu.reciprocal %32 {approx = true} : vector<1x8x1xf32> -> vector<1x8x1xf32>
    %35 = vector.broadcast %34 : vector<1x8x1xf32> to vector<1x8x8xf32>
    %36 = arith.mulf %33, %35 : vector<1x8x8xf32>
    %37 = vector.shape_cast %36 : vector<1x8x8xf32> to vector<8x8xf32>
    %c0_15 = arith.constant 0 : index
    %c0_16 = arith.constant 0 : index
    %38 = vector.load %arg7[%c0_15, %c0_16] : memref<8x32xf32, #tpu.memory_space<vmem>>, vector<8x8xf32>
    tpu.vector_store %arg7[%c0_15, %c0_16], %37 {strides = array<i32>} : memref<8x32xf32, #tpu.memory_space<vmem>>, vector<8x8xf32>,
    %39 = vector.extract_strided_slice %10 {offsets = [0, 8], sizes = [8, 8], strides = [1, 1]} : vector<8x32xf32> to vector<8x8xf32>
    %40 = vector.shape_cast %39 : vector<8x8xf32> to vector<1x8x8xf32>
    %41 = vector.extract_strided_slice %7 {offsets = [0, 40], sizes = [8, 8], strides = [1, 1]} : vector<8x96xf32> to vector<8x8xf32>
    %42 = vector.shape_cast %41 : vector<8x8xf32> to vector<1x8x8xf32>
    %43 = vector.extract_strided_slice %7 {offsets = [0, 72], sizes = [8, 8], strides = [1, 1]} : vector<8x96xf32> to vector<8x8xf32>
    %44 = vector.shape_cast %43 : vector<8x8xf32> to vector<1x8x8xf32>
    "tpu.trace_start"() <{level = 10 : i32, message = "bqd,bkd->bqk"}> : () -> ()
    %cst_17 = arith.constant dense<0.000000e+00> : vector<1x8x8xf32>
    %45 = tpu.matmul %40, %42, %cst_17 {dimension_numbers = #tpu.dot_dimension_numbers<[2], [2], [1], [1], [0, 0, 0, 1, 1, 1], [0], [0]>} : vector<1x8x8xf32>, vector<1x8x8xf32>, vector<1x8x8xf32> -> vector<1x8x8xf32>
    "tpu.trace_stop"() : () -> ()
    %46 = arith.addf %45, %17 : vector<1x8x8xf32>
    %cst_18 = arith.constant dense<0xFF800000> : vector<1x8xf32>
    %47 = vector.multi_reduction <maximumf>, %46, %cst_18 [2] : vector<1x8x8xf32> to vector<1x8xf32>
    %48 = vector.shape_cast %47 : vector<1x8xf32> to vector<1x8x1xf32>
    %49 = vector.broadcast %48 : vector<1x8x1xf32> to vector<1x8x8xf32>
    %50 = arith.subf %46, %49 : vector<1x8x8xf32>
    %51 = math.exp %50 : vector<1x8x8xf32>
    %cst_19 = arith.constant dense<0.000000e+00> : vector<1x8xf32>
    %52 = vector.multi_reduction <add>, %51, %cst_19 [2] : vector<1x8x8xf32> to vector<1x8xf32>
    %53 = vector.shape_cast %52 : vector<1x8xf32> to vector<1x8x1xf32>
    "tpu.trace_start"() <{level = 10 : i32, message = "bqk,bkd->bqd"}> : () -> ()
    %cst_20 = arith.constant dense<0.000000e+00> : vector<1x8x8xf32>
    %54 = tpu.matmul %51, %44, %cst_20 {dimension_numbers = #tpu.dot_dimension_numbers<[2], [1], [1], [2], [0, 0, 0, 1, 1, 2], [0], [0]>} : vector<1x8x8xf32>, vector<1x8x8xf32>, vector<1x8x8xf32> -> vector<1x8x8xf32>
    "tpu.trace_stop"() : () -> ()
    %55 = tpu.reciprocal %53 {approx = true} : vector<1x8x1xf32> -> vector<1x8x1xf32>
    %56 = vector.broadcast %55 : vector<1x8x1xf32> to vector<1x8x8xf32>
    %57 = arith.mulf %54, %56 : vector<1x8x8xf32>
    %58 = vector.shape_cast %57 : vector<1x8x8xf32> to vector<8x8xf32>
    %c0_21 = arith.constant 0 : index
    %c8 = arith.constant 8 : index
    %59 = vector.load %arg7[%c0_21, %c8] : memref<8x32xf32, #tpu.memory_space<vmem>>, vector<8x8xf32>
    tpu.vector_store %arg7[%c0_21, %c8], %58 {strides = array<i32>} : memref<8x32xf32, #tpu.memory_space<vmem>>, vector<8x8xf32>,
    %60 = vector.extract_strided_slice %10 {offsets = [0, 16], sizes = [8, 8], strides = [1, 1]} : vector<8x32xf32> to vector<8x8xf32>
    %61 = vector.shape_cast %60 : vector<8x8xf32> to vector<1x8x8xf32>
    %62 = vector.extract_strided_slice %7 {offsets = [0, 48], sizes = [8, 8], strides = [1, 1]} : vector<8x96xf32> to vector<8x8xf32>
    %63 = vector.shape_cast %62 : vector<8x8xf32> to vector<1x8x8xf32>
    %64 = vector.extract_strided_slice %7 {offsets = [0, 80], sizes = [8, 8], strides = [1, 1]} : vector<8x96xf32> to vector<8x8xf32>
    %65 = vector.shape_cast %64 : vector<8x8xf32> to vector<1x8x8xf32>
    "tpu.trace_start"() <{level = 10 : i32, message = "bqd,bkd->bqk"}> : () -> ()
    %cst_22 = arith.constant dense<0.000000e+00> : vector<1x8x8xf32>
    %66 = tpu.matmul %61, %63, %cst_22 {dimension_numbers = #tpu.dot_dimension_numbers<[2], [2], [1], [1], [0, 0, 0, 1, 1, 1], [0], [0]>} : vector<1x8x8xf32>, vector<1x8x8xf32>, vector<1x8x8xf32> -> vector<1x8x8xf32>
    "tpu.trace_stop"() : () -> ()
    %67 = arith.addf %66, %17 : vector<1x8x8xf32>
    %cst_23 = arith.constant dense<0xFF800000> : vector<1x8xf32>
    %68 = vector.multi_reduction <maximumf>, %67, %cst_23 [2] : vector<1x8x8xf32> to vector<1x8xf32>
    %69 = vector.shape_cast %68 : vector<1x8xf32> to vector<1x8x1xf32>
    %70 = vector.broadcast %69 : vector<1x8x1xf32> to vector<1x8x8xf32>
    %71 = arith.subf %67, %70 : vector<1x8x8xf32>
    %72 = math.exp %71 : vector<1x8x8xf32>
    %cst_24 = arith.constant dense<0.000000e+00> : vector<1x8xf32>
    %73 = vector.multi_reduction <add>, %72, %cst_24 [2] : vector<1x8x8xf32> to vector<1x8xf32>
    %74 = vector.shape_cast %73 : vector<1x8xf32> to vector<1x8x1xf32>
    "tpu.trace_start"() <{level = 10 : i32, message = "bqk,bkd->bqd"}> : () -> ()
    %cst_25 = arith.constant dense<0.000000e+00> : vector<1x8x8xf32>
    %75 = tpu.matmul %72, %65, %cst_25 {dimension_numbers = #tpu.dot_dimension_numbers<[2], [1], [1], [2], [0, 0, 0, 1, 1, 2], [0], [0]>} : vector<1x8x8xf32>, vector<1x8x8xf32>, vector<1x8x8xf32> -> vector<1x8x8xf32>
    "tpu.trace_stop"() : () -> ()
    %76 = tpu.reciprocal %74 {approx = true} : vector<1x8x1xf32> -> vector<1x8x1xf32>
    %77 = vector.broadcast %76 : vector<1x8x1xf32> to vector<1x8x8xf32>
    %78 = arith.mulf %75, %77 : vector<1x8x8xf32>
    %79 = vector.shape_cast %78 : vector<1x8x8xf32> to vector<8x8xf32>
    %c0_26 = arith.constant 0 : index
    %c16 = arith.constant 16 : index
    %80 = vector.load %arg7[%c0_26, %c16] : memref<8x32xf32, #tpu.memory_space<vmem>>, vector<8x8xf32>
    tpu.vector_store %arg7[%c0_26, %c16], %79 {strides = array<i32>} : memref<8x32xf32, #tpu.memory_space<vmem>>, vector<8x8xf32>,
    %81 = vector.extract_strided_slice %10 {offsets = [0, 24], sizes = [8, 8], strides = [1, 1]} : vector<8x32xf32> to vector<8x8xf32>
    %82 = vector.shape_cast %81 : vector<8x8xf32> to vector<1x8x8xf32>
    %83 = vector.extract_strided_slice %7 {offsets = [0, 56], sizes = [8, 8], strides = [1, 1]} : vector<8x96xf32> to vector<8x8xf32>
    %84 = vector.shape_cast %83 : vector<8x8xf32> to vector<1x8x8xf32>
    %85 = vector.extract_strided_slice %7 {offsets = [0, 88], sizes = [8, 8], strides = [1, 1]} : vector<8x96xf32> to vector<8x8xf32>
    %86 = vector.shape_cast %85 : vector<8x8xf32> to vector<1x8x8xf32>
    "tpu.trace_start"() <{level = 10 : i32, message = "bqd,bkd->bqk"}> : () -> ()
    %cst_27 = arith.constant dense<0.000000e+00> : vector<1x8x8xf32>
    %87 = tpu.matmul %82, %84, %cst_27 {dimension_numbers = #tpu.dot_dimension_numbers<[2], [2], [1], [1], [0, 0, 0, 1, 1, 1], [0], [0]>} : vector<1x8x8xf32>, vector<1x8x8xf32>, vector<1x8x8xf32> -> vector<1x8x8xf32>
    "tpu.trace_stop"() : () -> ()
    %88 = arith.addf %87, %17 : vector<1x8x8xf32>
    %cst_28 = arith.constant dense<0xFF800000> : vector<1x8xf32>
    %89 = vector.multi_reduction <maximumf>, %88, %cst_28 [2] : vector<1x8x8xf32> to vector<1x8xf32>
    %90 = vector.shape_cast %89 : vector<1x8xf32> to vector<1x8x1xf32>
    %91 = vector.broadcast %90 : vector<1x8x1xf32> to vector<1x8x8xf32>
    %92 = arith.subf %88, %91 : vector<1x8x8xf32>
    %93 = math.exp %92 : vector<1x8x8xf32>
    %cst_29 = arith.constant dense<0.000000e+00> : vector<1x8xf32>
    %94 = vector.multi_reduction <add>, %93, %cst_29 [2] : vector<1x8x8xf32> to vector<1x8xf32>
    %95 = vector.shape_cast %94 : vector<1x8xf32> to vector<1x8x1xf32>
    "tpu.trace_start"() <{level = 10 : i32, message = "bqk,bkd->bqd"}> : () -> ()
    %cst_30 = arith.constant dense<0.000000e+00> : vector<1x8x8xf32>
    %96 = tpu.matmul %93, %86, %cst_30 {dimension_numbers = #tpu.dot_dimension_numbers<[2], [1], [1], [2], [0, 0, 0, 1, 1, 2], [0], [0]>} : vector<1x8x8xf32>, vector<1x8x8xf32>, vector<1x8x8xf32> -> vector<1x8x8xf32>
    "tpu.trace_stop"() : () -> ()
    %97 = tpu.reciprocal %95 {approx = true} : vector<1x8x1xf32> -> vector<1x8x1xf32>
    %98 = vector.broadcast %97 : vector<1x8x1xf32> to vector<1x8x8xf32>
    %99 = arith.mulf %96, %98 : vector<1x8x8xf32>
    %100 = vector.shape_cast %99 : vector<1x8x8xf32> to vector<8x8xf32>
    %c0_31 = arith.constant 0 : index
    %c24 = arith.constant 24 : index
    %101 = vector.load %arg7[%c0_31, %c24] : memref<8x32xf32, #tpu.memory_space<vmem>>, vector<8x8xf32>
    tpu.vector_store %arg7[%c0_31, %c24], %100 {strides = array<i32>} : memref<8x32xf32, #tpu.memory_space<vmem>>, vector<8x8xf32>,
    %c0_32 = arith.constant 0 : index
    %c0_33 = arith.constant 0 : index
    %102 = vector.load %arg7[%c0_32, %c0_33] : memref<8x32xf32, #tpu.memory_space<vmem>>, vector<8x32xf32>
    %cst_34 = arith.constant dense<0.000000e+00> : vector<8x32xf32>
    %103 = tpu.matmul %102, %3, %cst_34 {dimension_numbers = #tpu.dot_dimension_numbers<[1], [0], [0], [1], [0, 0, 1, 1], [], []>} : vector<8x32xf32>, vector<32x32xf32>, vector<8x32xf32> -> vector<8x32xf32>
    %c0_35 = arith.constant 0 : index
    %c0_36 = arith.constant 0 : index
    %104 = vector.load %arg5[%c0_35, %c0_36] : memref<1x32xf32, #tpu.memory_space<vmem>>, vector<1x32xf32>
    %105 = vector.broadcast %104 : vector<1x32xf32> to vector<8x32xf32>
    %106 = arith.addf %103, %105 : vector<8x32xf32>
    %107 = vector.shape_cast %106 : vector<8x32xf32> to vector<1x8x32xf32>
    %c0_37 = arith.constant 0 : index
    %c0_38 = arith.constant 0 : index
    %c0_39 = arith.constant 0 : index
    %108 = vector.load %arg6[%c0_37, %c0_38, %c0_39] : memref<1x8x32xf32, #tpu.memory_space<vmem>>, vector<1x8x32xf32>
    tpu.vector_store %arg6[%c0_37, %c0_38, %c0_39], %107 {strides = array<i32>} : memref<1x8x32xf32, #tpu.memory_space<vmem>>, vector<1x8x32xf32>,
    return
  }
  func.func @transform_0(%arg0: i32) -> (i32, i32, i32) {
    %c0_i32 = arith.constant 0 : i32
    %c0_i32_0 = arith.constant 0 : i32
    %c0_i32_1 = arith.constant 0 : i32
    return %arg0, %c0_i32, %c0_i32_0 : i32, i32, i32
  }
  func.func @transform_1(%arg0: i32) -> (i32, i32) {
    %c0_i32 = arith.constant 0 : i32
    %c0_i32_0 = arith.constant 0 : i32
    %c0_i32_1 = arith.constant 0 : i32
    return %c0_i32, %c0_i32_0 : i32, i32
  }
  func.func @transform_2(%arg0: i32) -> (i32, i32) {
    %c0_i32 = arith.constant 0 : i32
    %c0_i32_0 = arith.constant 0 : i32
    %c0_i32_1 = arith.constant 0 : i32
    return %c0_i32, %c0_i32_0 : i32, i32
  }
  func.func @transform_3(%arg0: i32) -> (i32, i32) {
    %c0_i32 = arith.constant 0 : i32
    %c0_i32_0 = arith.constant 0 : i32
    %c0_i32_1 = arith.constant 0 : i32
    return %c0_i32, %c0_i32_0 : i32, i32
  }
  func.func @transform_4(%arg0: i32) -> (i32, i32) {
    %c0_i32 = arith.constant 0 : i32
    %c0_i32_0 = arith.constant 0 : i32
    %c0_i32_1 = arith.constant 0 : i32
    return %c0_i32, %c0_i32_0 : i32, i32
  }
  func.func @transform_5(%arg0: i32) -> (i32, i32, i32) {
    %c0_i32 = arith.constant 0 : i32
    %c0_i32_0 = arith.constant 0 : i32
    %c0_i32_1 = arith.constant 0 : i32
    return %arg0, %c0_i32, %c0_i32_0 : i32, i32, i32
  }
}

</mosaic_0001>

<bundles_post_ra>
// kernel: tpu_custom_call.1
= control target key start
LH: loop header
LB: loop body
LE: loop exit
PB: predicated region body
PF: predicated region fallthrough
CT: control target
= control target key end

     0   :  { %10 = vsyncpa [#allocation4], 0  ;;  %s1255_s0 = inlined_call_operand.hbm [shape: f32[2,8,32], index: 0, kind: input, shape index: {}]   ;;  %s1256_s1 = inlined_call_operand.hbm [shape: f32[32,96], index: 1, kind: input, shape index: {}]   ;;  %s1257_s2 = inlined_call_operand.vmem [shape: f32[1,96], index: 2, kind: input, shape index: {}]   ;;  %s1258_s3 = inlined_call_operand.hbm [shape: f32[32,32], index: 3, kind: input, shape index: {}]   ;;  %s1259_s4 = inlined_call_operand.vmem [shape: f32[1,32], index: 4, kind: input, shape index: {}]   ;;  %s1260_s5 = inlined_call_operand.hbm [shape: f32[2,8,32], index: 5, kind: output, shape index: {}]  }
   0x1   :  { %12 = vsyncpa [#allocation4 + $0x1], 0 }
   0x2   :  { %13 = vsyncpa [#allocation7], 0 }
   0x3   :  { %14 = vsyncpa [#allocation5], 0 }
   0x4   :  { %16 = vsyncpa [#allocation5 + $0x1], 0  ;;  %s1076_s18 = smov 0   ;;  %s1078_s19 = smov 0  }
   0x5   :  { %s1080_s20 = smov 0   ;;  %s1082_s21 = smov 0  }
   0x6 LB: > { %s174_s24 = sshll.u32 %s1256_s1, 4  ;;  %s1100_s25 = sadd.s32 4294967295, %s1025_s21   ;;  %s1025_s21 = sphi %s1082_s21, %s1271_s21   ;;  %s1021_s20 = sphi %s1080_s20, %s1270_s20   ;;  %s1017_s19 = sphi %s1078_s19, %s1269_s19   ;;  %s1013_s18 = sphi %s1076_s18, %s1268_s18   ;;  %s175_s24 = int_to_ptr.hbm [resolvable:$true] %s174_s24 }
   0x7   : > { %p734_p0 = scmp.ge.s32.totalorder %s1025_s21, 1  ;;  %p43_p1 = scmp.eq.s32.totalorder %s1100_s25, 0 }
   0x8   : > { %p163_p2 = scmp.lt.s32.totalorder %s1025_s21, 3  ;;  %s1027_s27 = smov [#allocation6]  }
   0x9   : > { %s176_s28 = sshll.u32 %s1027_s27, 4  ;;  %s191_s6 = sshll.u32 %s1258_s3, 4  ;;  %s177_s28 = int_to_ptr.vmem [resolvable:$true] %s176_s28  ;;  %s192_s6 = int_to_ptr.hbm [resolvable:$true] %s191_s6 }
   0xa   : > { %p1105_p3 = pnand %p734_p0, %p163_p2  ;;  %s1028_s7 = smov [#allocation8]  }
   0xb   : > { %s193_s8 = sshll.u32 %s1028_s7, 4  ;;  %s1029_s9 = smov 128   ;;  %s194_s8 = int_to_ptr.vmem [resolvable:$true] %s193_s8 }
   0xc   : > { %p775_p4 = pneg %p1105_p3  ;;  %s1030_s10 = smov 8  }
   0xd   : > { %s733_s11 = sadd.s32 4294967294, %s1025_s21   ;;  %s1119_s12 = sadd.s32 1, %s1025_s21  }
   0xe   : > { %p776_p6 = pnand %p775_p4, %p43_p1  ;;  %s26_s13 = ssub.s32 %s1025_s21, %s1119_s12 }
   0xf   : > { %s29_s14 = sadd.s32 1, %s1021_s20  ;;  %p27_p7 = scmp.eq.s32.totalorder %s26_s13, 0 }
  0x10   : > { %778 = dma.hbm_to_vmem [thread:$0]  (!%p776_p6), %s175_s24, 512, %s177_s28, [#allocation7], %s1029_s9, %s1029_s9, %s1030_s10  }
  0x11   : > { %781 = dma.hbm_to_vmem [thread:$0]  (!%p776_p6), %s192_s6, 512, %s194_s8, [#allocation7], %s1029_s9, %s1029_s9, %s1030_s10  }
  0x12   : > { %p36_p8 = scmp.ne.s32.totalorder %s1021_s20, %s1017_s19  ;;  %p37_p9 = scmp.eq.s32.totalorder %s1025_s21, 0 }
  0x13   : > { %p42_p10 = scmp.ne.s32.totalorder %s1017_s19, %s1013_s18  ;;  %p150_p13 = scmp.eq.s32.totalorder %s1100_s25, 1 }
  0x14   : > { %s1130_s15 = scalar_select %p27_p7, %s1021_s20, %s29_s14  }
  0x15   : > { %p1132_p11 = por %p37_p9, %p36_p8  ;;  %p1138_p12 = por %p43_p1, %p42_p10 }
  0x16   : > { %p156_p0 = scmp.eq.s32.totalorder %s733_s11, 1  ;;  %p792_p2 = scmp.lt.s32.totalorder %s1025_s21, 2 }
  0x17   : > { %s210_s22 = sand.u32 1, %s1021_s20   ;;  %p1145_p4 = por %p150_p13, %p36_p8 }
  0x18   : > { %p1149_p6 = por %p156_p0, %p42_p10  ;;  %s738_s27 = sshll.u32 %s210_s22, 3 }
  0x19   : > { %s739_s28 = sshll.u32 %s1025_s21, 3  ;;  %s214_s7 = scalar_lea.vmem [#allocation3], %s738_s27 }
  0x1a   : > { %s218_s6 = scalar_lea.hbm %s1255_s0, %s739_s28  ;;  %s222_s8 = sshll.u32 %s214_s7, 4  ;;  %s223_s8 = int_to_ptr.vmem [resolvable:$true] %s222_s8 }
  0x1b   : > { %s220_s9 = sshll.u32 %s218_s6, 4  ;;  %p1159_p7 = pnand %p792_p2, %p1132_p11  ;;  %s221_s9 = int_to_ptr.hbm [resolvable:$true] %s220_s9 }
  0x1c   : > { %s211_s11 = scalar_lea.sflag [#allocation4], %s210_s22  ;;  %s925_s13 = sshra.s32 %s221_s9, 4  ;;  %s926_s13 = int_to_ptr.hbm [resolvable:$true] %s925_s13 }
  0x1d   : > { %s927_s14 = scalar_lea.hbm %s926_s13, 8  ;;  %p929_p9 = pneg %p1159_p7 }
  0x1e   : > { %p928_p8 = scmp.ne.s32.totalorder %s926_s13, %s927_s14  ;;  %s932_s29 = scalar_lea.hbm %s1255_s0, 16 }
  0x1f   : > { %p933_p11 = scmp.lt.s32.totalorder %s926_s13, %s1255_s0  ;;  %p934_p0 = scmp.lt.s32.totalorder %s932_s29, %s927_s14 }
  0x20   : > { %p930_p10 = pnand %p929_p9, %p928_p8 }
  0x21   : > { %p935_p2 = por %p934_p0, %p933_p11 }
  0x22   : > { %p931_p13 = pneg %p930_p10 }
  0x24   : > { %p936_p5 = pnand %p935_p2, %p931_p13 }
  0x26   : > { %939 = shalt.err (!%p936_p5)
}
  0x27   : > { %785 = dma.hbm_to_vmem [thread:$0]  (!%p1159_p7), %s221_s9, 128, %s223_s8, %s211_s11  }
  0x28   : > { %231 = sbr.rel (%p1105_p3) target bundleno = 975 (0x3cf), region = 40  ;;  %s1176_s22 = sand.u32 (!%p1105_p3), 1, %s1017_s19  }
  0x29   : > { %s741_s6 = sshll.u32 (!%p1105_p3), %s1176_s22, 3  ;;  %s234_s7 = scalar_lea.sflag (!%p1105_p3), [#allocation4], %s1176_s22 }
  0x2a   : > { %s237_s13 = scalar_lea.vmem (!%p1105_p3), [#allocation3], %s741_s6 }
  0x2d   : > { %1000 = dma.done.wait (%p1138_p12), %s234_s7, 128  }
  0x2e   : > { %1002 = vsyncadd (%p1138_p12), %s234_s7, 4294967168 }
  0x2f   : > { %1004 = dma.done.wait (%p43_p1), [#allocation7], 1024  }
  0x30   : > { %1006 = vsyncadd (%p43_p1), [#allocation7], 4294966272  ;;  %v279_v0 = vld [vmem:[#allocation6 + $0x18] sm:$0xff]  ;;  %v278_v1 = vld [vmem:[#allocation6 + $0x10] sm:$0xff]  ;;  %vm288_vm0 = vcmask 261120   ;;  %s1031_s8 = smov 72   ;;  %v313_v17 = vlaneseq }
  0x31   : > { %304 = vmatpush.msra.mxu0 %v279_v0  ;;  %v277_v2 = vld [vmem:[#allocation6 + $0x8] sm:$0xff]  ;;  %v276_v3 = vld [vmem:[#allocation6] sm:$0xff]  ;;  %v275_v4 = vld [vmem:[%s237_s13] sm:$0xff]  ;;  %s1032_s9 = smov 96   ;;  %s1033_s10 = smov 120   ;;  %vm322_vm1 = vcmask 64512  }
  0x32   : > { %v847_v5 = vld [vmem:[%s1257_s2] ss:$0 sm:$0xff]  ;;  %s1034_s11 = smov 88   ;;  %s1035_s14 = smov 112   ;;  %v314_v18 = vshrl.u32 %v313_v17, 7  ;;  %v316_v19 = vand.u32 127, %v313_v17 }
  0x33   : > { %305 = vmatpush.msra.mxu0 %v278_v1  ;;  %s1036_s27 = smov 80   ;;  %s1037_s28 = smov 104   ;;  %v1039_v20 = vmov -1e+30   ;;  %vm455_vm3 = vcmask 130112   ;;  %vm526_vm4 = vcmask 195712  }
  0x34   : > { %s1038_s29 = smov 64   ;;  %vm317_vm2 = vcmp.ge.s32.totalorder %v314_v18, %v316_v19  ;;  %s1040_s30 = smov 56   ;;  %vm597_vm5 = vcmask 261312   ;;  %v848_v17 = vld [vmem:[%s1259_s4] ss:$0 sm:$0xff] }
  0x35   : > { %306 = vmatpush.msra.mxu0 %v277_v2  ;;  %v318_v21 = vsel %vm317_vm2, 0.0, %v1039_v20  ;;  %s1041_s16 = smov 40   ;;  %s1042_s7 = smov 48  }
  0x36   : > { %s1043_s13 = smov 16   ;;  %s1044_s26 = smov 8  }
  0x37   : > { %307 = vmatpush.msra.mxu0 %v276_v3  ;;  %s1045_s17 = smov 24  }
  0x38   : > { %745 = vmatmul.msk.f32.vlgmr.msra.gmra.mxu0 %vm288_vm0, %v275_v4 }
  0xb5   : > { %v309_v6 = vpop.f32.mrf.mxu0 }
  0xb6   : > { %v310_v7 = vadd.f32 %v847_v5, %v309_v6 }
  0xb8   : > { %530 = vrot.lane.b32.xlu2 %v310_v7, %s1031_s8  ;;  %320 = vrot.lane.b32.xlu0 %v310_v7, %s1032_s9  ;;  %v312_v8 = vmul.f32 0.35355338, %v310_v7  ;;  %s760_s8 = sshll.u32 %s1100_s25, 3  ;;  %s629_s25 = scalar_lea.sflag [#allocation5], %s1176_s22 }
  0xba   : > { %386 = vrot.lane.b32.xlu1 %v312_v8, %s1033_s10 }
  0xc0   : > { %388 = vrot.lane.b32.xlu0 %v310_v7, %s1034_s11  ;;  %457 = vrot.lane.b32.xlu2 %v312_v8, %s1035_s14  ;;  %s639_s11 = scalar_lea.hbm %s1260_s5, %s760_s8 }
  0xc2   : > { %459 = vrot.lane.b32.xlu1 %v310_v7, %s1036_s27 }
  0xc8   : > { %528 = vrot.lane.b32.xlu0 %v312_v8, %s1037_s28  ;;  %s274_s28 = scalar_lea.vmem [#allocation9], %s741_s6  ;;  %s975_s6 = scalar_lea.hbm %s1260_s5, 16 }
  0xd0   : > { %357 = vrot.lane.b32.xlu0 %v310_v7, %s1038_s29  ;;  %s641_s29 = sshll.u32 %s274_s28, 4  ;;  %s642_s29 = int_to_ptr.vmem [resolvable:$true] %s641_s29 }
 0x112   : > { %v531_v9 = vpop.permute.xlu2 %530 }
 0x113   : > { %755 = vmatpush.xpose.msk.msrb.mxu0 %vm322_vm1, %v531_v9 }
 0x11a   : > { %v458_v14 = vpop.permute.xlu2 %457 }
 0x12a   : > { %v321_v10 = vpop.permute.xlu0 %320 }
 0x12b   : > { %746 = vmatpush.xpose.msk.msra.mxu1 %vm322_vm1, %v321_v10  ;;  %v283_v10 = vld [vmem:[#allocation8 + $0x18] sm:$0xff] }
 0x12c   : > { %v387_v11 = vpop.permute.xlu1 %386 }
 0x12e   : > { %747 = vmatmul.msk.f32.vlgmr.msra.gmra.mxu1 %vm322_vm1, %v312_v8 }
 0x132   : > { %v389_v12 = vpop.permute.xlu0 %388 }
 0x133   : > { %749 = vmatpush.xpose.msk.msra.mxu3 %vm322_vm1, %v389_v12  ;;  %v281_v12 = vld [vmem:[#allocation8 + $0x8] sm:$0xff] }
 0x134   : > { %v460_v13 = vpop.permute.xlu1 %459 }
 0x135   : > { %752 = vmatpush.xpose.msk.msrb.mxu1 %vm322_vm1, %v460_v13  ;;  %v280_v13 = vld [vmem:[#allocation8] sm:$0xff] }
 0x136   : > { %750 = vmatmul.msk.f32.vlgmr.msra.gmra.mxu3 %vm322_vm1, %v387_v11  ;;  %v282_v11 = vld [vmem:[#allocation8 + $0x10] sm:$0xff] }
 0x138   : > { %753 = vmatmul.msk.f32.vlgmr.msrb.gmra.mxu1 %vm322_vm1, %v458_v14 }
 0x139   : > { %619 = vmatpush.msra.mxu1 %v283_v10 }
 0x13a   : > { %v529_v15 = vpop.permute.xlu0 %528 }
 0x13b   : > { %756 = vmatmul.msk.f32.vlgmr.msrb.gmra.mxu0 %vm322_vm1, %v529_v15  ;;  %620 = vmatpush.msra.mxu1 %v282_v11 }
 0x13d   : > { %621 = vmatpush.msra.mxu1 %v281_v12 }
 0x13f   : > { %622 = vmatpush.msra.mxu1 %v280_v13 }
 0x142   : > { %v358_v16 = vpop.permute.xlu0 %357 }
 0x143   : > { %378 = vmatpush.msra.mxu2 %v358_v16 }
 0x1ab   : > { %v345_v22 = vpop.f32.mrf.mxu1 }
 0x1ac   : > { %v346_v23 = vadd.f32 %v345_v22, %v318_v21 }
 0x1ae   : > { %v348_v24 = vsel %vm322_vm1, %v346_v23, -inf }
 0x1af   : > { %349 = vmax.xlane.f32.xlu1 %v348_v24 }
 0x1b5   : > { %v482_v25 = vpop.f32.mrf.mxu1 }
 0x1b6   : > { %v483_v26 = vadd.f32 %v482_v25, %v318_v21 }
 0x1b8   : > { %v553_v27 = vpop.f32.mrf.mxu0  ;;  %v485_v28 = vsel %vm322_vm1, %v483_v26, -inf }
 0x1b9   : > { %v554_v29 = vadd.f32 %v553_v27, %v318_v21  ;;  %486 = vmax.xlane.f32.xlu0 %v485_v28  ;;  %v411_v31 = vpop.f32.mrf.mxu3 }
 0x1ba   : > { %v412_v32 = vadd.f32 %v411_v31, %v318_v21 }
 0x1bb   : > { %v556_v30 = vsel %vm322_vm1, %v554_v29, -inf }
 0x1bc   : > { %557 = vmax.xlane.f32.xlu2 %v556_v30  ;;  %v414_v33 = vsel %vm322_vm1, %v412_v32, -inf }
 0x1c4   : > { %415 = vmax.xlane.f32.xlu2 %v414_v33 }
 0x1c8   : > { %423 = vrot.lane.b32.xlu1 %v310_v7, %s1040_s30  ;;  %s643_s30 = sshll.u32 %s639_s11, 4  ;;  %s644_s30 = int_to_ptr.hbm [resolvable:$true] %s643_s30 }
 0x1cd   : > { %565 = vrot.lane.b32.xlu0 %v310_v7, %s1041_s16  ;;  %s969_s16 = sshra.s32 %s644_s30, 4  ;;  %s970_s16 = int_to_ptr.hbm [resolvable:$true] %s969_s16 }
 0x1ce   : > { %p976_p12 = scmp.lt.s32.totalorder %s970_s16, %s1260_s5 }
 0x1dc   : > { %494 = vrot.lane.b32.xlu2 %v310_v7, %s1042_s7  ;;  %s971_s7 = scalar_lea.hbm %s970_s16, 8 }
 0x1dd   : > { %p972_p1 = scmp.ne.s32.totalorder %s970_s16, %s971_s7  ;;  %p977_p7 = scmp.lt.s32.totalorder %s975_s6, %s971_s7 }
 0x1df   : > { %p973_p3 = pnand %p972_p1, %p1145_p4  ;;  %p978_p8 = por %p977_p7, %p976_p12 }
 0x1e1   : > { %p974_p5 = pneg %p973_p3 }
 0x1e3   : > { %p979_p9 = pnand %p978_p8, %p974_p5 }
 0x222   : > { %v350_v34 = vpop.xlane.xlu1 %349 }
 0x223   : > { %v351_v35 = vsub.f32 %v346_v23, %v350_v34 }
 0x225   : > { %v352_v36 = vmul.f32 1.442695, %v351_v35 }
 0x227   : > { %849 = vpow2.f32 %v352_v36 }
 0x22c   : > { %v487_v37 = vpop.xlane.xlu0 %486 }
 0x22d   : > { %v850_v38 = vpop.eup %849  ;;  %v488_v39 = vsub.f32 %v483_v26, %v487_v37 }
 0x22e   : > { %748 = vmatmul.msk.f32.vlgmr.msra.gmra.mxu2 %vm322_vm1, %v850_v38  ;;  %v354_v56 = vsel %vm322_vm1, %v850_v38, 0.0 }
 0x22f   : > { %v489_v40 = vmul.f32 1.442695, %v488_v39  ;;  %v558_v41 = vpop.xlane.xlu2 %557 }
 0x230   : > { %v559_v42 = vsub.f32 %v554_v29, %v558_v41 }
 0x231   : > { %851 = vpow2.f32 %v489_v40 }
 0x232   : > { %v560_v43 = vmul.f32 1.442695, %v559_v42 }
 0x234   : > { %853 = vpow2.f32 %v560_v43 }
 0x237   : > { %v852_v44 = vpop.eup %851  ;;  %v416_v45 = vpop.xlane.xlu2 %415 }
 0x238   : > { %v417_v46 = vsub.f32 %v412_v32, %v416_v45  ;;  %v491_v47 = vsel %vm322_vm1, %v852_v44, 0.0 }
 0x239   : > { %492 = vadd.xlane.f32.xlu2 %v491_v47 }
 0x23a   : > { %v854_v48 = vpop.eup %853  ;;  %v418_v49 = vmul.f32 1.442695, %v417_v46  ;;  %v424_v50 = vpop.permute.xlu1 %423 }
 0x23b   : > { %444 = vmatpush.msrb.mxu2 %v424_v50  ;;  %v562_v51 = vsel %vm322_vm1, %v854_v48, 0.0 }
 0x23c   : > { %855 = vpow2.f32 %v418_v49  ;;  %563 = vadd.xlane.f32.xlu0 %v562_v51 }
 0x23f   : > { %v495_v52 = vpop.permute.xlu2 %494  ;;  %v566_v53 = vpop.permute.xlu0 %565 }
 0x240   : > { %515 = vmatpush.msrb.mxu3 %v495_v52  ;;  %586 = vmatpush.msra.mxu2 %v566_v53 }
 0x241   : > { %754 = vmatmul.msk.f32.vlgmr.msrb.gmra.mxu3 %vm322_vm1, %v852_v44 }
 0x242   : > { %v856_v54 = vpop.eup %855 }
 0x243   : > { %751 = vmatmul.msk.f32.vlgmr.msrb.gmra.mxu2 %vm322_vm1, %v856_v54  ;;  %v420_v55 = vsel %vm322_vm1, %v856_v54, 0.0 }
 0x244   : > { %421 = vadd.xlane.f32.xlu1 %v420_v55 }
 0x24b   : > { %757 = vmatmul.msk.f32.vlgmr.msra.gmra.mxu2 %vm322_vm1, %v854_v48 }
 0x24c   : > { %355 = vadd.xlane.f32.xlu1 %v354_v56 }
 0x2ac   : > { %v493_v58 = vpop.xlane.xlu2 %492 }
 0x2ad   : > { %857 = vrcp.f32 %v493_v58 }
 0x2af   : > { %v564_v0 = vpop.xlane.xlu0 %563 }
 0x2b1   : > { %v380_v59 = vpop.f32.mrf.mxu2 }
 0x2b3   : > { %v858_v61 = vpop.eup %857 }
 0x2b7   : > { %v422_v57 = vpop.xlane.xlu1 %421 }
 0x2b8   : > { %859 = vrcp.f32 %v422_v57 }
 0x2be   : > { %v860_v63 = vpop.eup %859 }
 0x2bf   : > { %v356_v60 = vpop.xlane.xlu1 %355 }
 0x2c0   : > { %861 = vrcp.f32 %v356_v60 }
 0x2c1   : > { %863 = vrcp.f32 %v564_v0 }
 0x2c4   : > { %v517_v62 = vpop.f32.mrf.mxu3 }
 0x2c5   : > { %v521_v1 = vmul.f32 %v858_v61, %v517_v62 }
 0x2c6   : > { %v862_v2 = vpop.eup %861  ;;  %v446_v3 = vpop.f32.mrf.mxu2 }
 0x2c7   : > { %v384_v4 = vmul.f32 %v862_v2, %v380_v59  ;;  %v450_v5 = vmul.f32 %v860_v63, %v446_v3  ;;  %523 = vrot.lane.b32.xlu1 %v521_v1, %s1043_s13  ;;  %v864_v6 = vpop.eup %863 }
 0x2c9   : > { %385 = vst.msk [vmem:[#allocation2] sm:$0xff] %vm322_vm1, %v384_v4  ;;  %452 = vrot.lane.b32.xlu2 %v450_v5, %s1044_s26 }
 0x2ce   : > { %v588_v7 = vpop.f32.mrf.mxu2 }
 0x2cf   : > { %v592_v8 = vmul.f32 %v864_v6, %v588_v7 }
 0x2d1   : > { %594 = vrot.lane.b32.xlu0 %v592_v8, %s1045_s17 }
 0x323   : > { %v453_v9 = vpop.permute.xlu2 %452 }
 0x324   : > { %456 = vst.msk [vmem:[#allocation2] sm:$0xff] %vm455_vm3, %v453_v9 }
 0x339   : > { %v524_v14 = vpop.permute.xlu1 %523 }
 0x33a   : > { %527 = vst.msk [vmem:[#allocation2] sm:$0xff] %vm526_vm4, %v524_v14 }
 0x343   : > { %v595_v15 = vpop.permute.xlu0 %594 }
 0x344   : > { %598 = vst.msk [vmem:[#allocation2] sm:$0xff] %vm597_vm5, %v595_v15 }
 0x34b   : > { %v599_v16 = vld [vmem:[#allocation2] sm:$0xff] }
 0x34c   : > { %758 = vmatmul.msk.f32.vlgmr.msra.gmra.mxu1 %vm288_vm0, %v599_v16 }
 0x3c9   : > { %v624_v18 = vpop.f32.mrf.mxu1 }
 0x3ca   : > { %v625_v19 = vadd.f32 %v848_v17, %v624_v18 }
 0x3cc   : > { %627 = vst.msk [vmem:[%s274_s28] sm:$0xff] %vm288_vm0, %v625_v19 }
 0x3cd   : > { %982 = shalt.err (!%p979_p9)
}
 0x3ce   : > { %773 = dma.vmem_to_hbm [thread:$0]  (%p1145_p4), %s642_s29, 128, %s644_s30, %s629_s25  }
 0x3cf PF: > { %s655_s22 = sand.u32 1, %s1013_s18   ;;  %p1267_p10 = scmp.ge.s32.totalorder %s1025_s21, 2 }
 0x3d0   : > { %s656_s9 = scalar_lea.sflag [#allocation5], %s655_s22 }
 0x3d1   : > { %p787_p13 = pnand %p1267_p10, %p1149_p6 }
 0x3d3   : > { %p788_p11 = pneg %p787_p13 }
 0x3d5   : > { %1008 = dma.done.wait (%p788_p11), %s656_s9, 128  }
 0x3d6   : > { %1010 = vsyncadd (%p788_p11), %s656_s9, 4294967168  ;;  %p19_p0 = scmp.ge.s32.totalorder %s1119_s12, 4   ;;  %s1268_s18 = smov %s1017_s19 }
 0x3d7   : > { %s1269_s19 = smov %s1021_s20  ;;  %s1270_s20 = smov %s1130_s15 }
 0x3d8   : > { %s1271_s21 = smov %s1119_s12  ;;  %21 = sbr.rel (!%p19_p0) target bundleno = 6 (0x6), region = 93 }
 0x3dd   :  { %662 = vsyncpa [#allocation4], 1 }
 0x3de   :  { %664 = vsyncpa [#allocation4 + $0x1], 1 }
 0x3df   :  { %665 = vsyncpa [#allocation7], 1 }
 0x3e0   :  { %666 = vsyncpa [#allocation5], 1 }
 0x3e1   :  { %668 = vsyncpa [#allocation5 + $0x1], 1 }

// kernel: tpu_custom_call.1
= control target key start
LH: loop header
LB: loop body
LE: loop exit
PB: predicated region body
PF: predicated region fallthrough
CT: control target
= control target key end

     0   :  { %10 = vsyncpa [#allocation4], 0  ;;  %s1255_s0 = inlined_call_operand.hbm [shape: f32[2,8,32], index: 0, kind: input, shape index: {}]   ;;  %s1256_s1 = inlined_call_operand.hbm [shape: f32[32,96], index: 1, kind: input, shape index: {}]   ;;  %s1257_s2 = inlined_call_operand.vmem [shape: f32[1,96], index: 2, kind: input, shape index: {}]   ;;  %s1258_s3 = inlined_call_operand.hbm [shape: f32[32,32], index: 3, kind: input, shape index: {}]   ;;  %s1259_s4 = inlined_call_operand.vmem [shape: f32[1,32], index: 4, kind: input, shape index: {}]   ;;  %s1260_s5 = inlined_call_operand.hbm [shape: f32[2,8,32], index: 5, kind: output, shape index: {}]  }
   0x1   :  { %12 = vsyncpa [#allocation4 + $0x1], 0 }
   0x2   :  { %13 = vsyncpa [#allocation7], 0 }
   0x3   :  { %14 = vsyncpa [#allocation5], 0 }
   0x4   :  { %16 = vsyncpa [#allocation5 + $0x1], 0  ;;  %s1076_s18 = smov 0   ;;  %s1078_s19 = smov 0  }
   0x5   :  { %s1080_s20 = smov 0   ;;  %s1082_s21 = smov 0  }
   0x6 LB: > { %s174_s24 = sshll.u32 %s1256_s1, 4  ;;  %s1100_s25 = sadd.s32 4294967295, %s1025_s21   ;;  %s1025_s21 = sphi %s1082_s21, %s1271_s21   ;;  %s1021_s20 = sphi %s1080_s20, %s1270_s20   ;;  %s1017_s19 = sphi %s1078_s19, %s1269_s19   ;;  %s1013_s18 = sphi %s1076_s18, %s1268_s18   ;;  %s175_s24 = int_to_ptr.hbm [resolvable:$true] %s174_s24 }
   0x7   : > { %p734_p0 = scmp.ge.s32.totalorder %s1025_s21, 1  ;;  %p43_p1 = scmp.eq.s32.totalorder %s1100_s25, 0 }
   0x8   : > { %p163_p2 = scmp.lt.s32.totalorder %s1025_s21, 3  ;;  %s1027_s27 = smov [#allocation6]  }
   0x9   : > { %s176_s28 = sshll.u32 %s1027_s27, 4  ;;  %s191_s6 = sshll.u32 %s1258_s3, 4  ;;  %s177_s28 = int_to_ptr.vmem [resolvable:$true] %s176_s28  ;;  %s192_s6 = int_to_ptr.hbm [resolvable:$true] %s191_s6 }
   0xa   : > { %p1105_p3 = pnand %p734_p0, %p163_p2  ;;  %s1028_s7 = smov [#allocation8]  }
   0xb   : > { %s193_s8 = sshll.u32 %s1028_s7, 4  ;;  %s1029_s9 = smov 128   ;;  %s194_s8 = int_to_ptr.vmem [resolvable:$true] %s193_s8 }
   0xc   : > { %p775_p4 = pneg %p1105_p3  ;;  %s1030_s10 = smov 8  }
   0xd   : > { %s733_s11 = sadd.s32 4294967294, %s1025_s21   ;;  %s1119_s12 = sadd.s32 1, %s1025_s21  }
   0xe   : > { %p776_p6 = pnand %p775_p4, %p43_p1  ;;  %s26_s13 = ssub.s32 %s1025_s21, %s1119_s12 }
   0xf   : > { %s29_s14 = sadd.s32 1, %s1021_s20  ;;  %p27_p7 = scmp.eq.s32.totalorder %s26_s13, 0 }
  0x10   : > { %778 = dma.hbm_to_vmem [thread:$0]  (!%p776_p6), %s175_s24, 512, %s177_s28, [#allocation7], %s1029_s9, %s1029_s9, %s1030_s10  }
  0x11   : > { %781 = dma.hbm_to_vmem [thread:$0]  (!%p776_p6), %s192_s6, 512, %s194_s8, [#allocation7], %s1029_s9, %s1029_s9, %s1030_s10  }
  0x12   : > { %p36_p8 = scmp.ne.s32.totalorder %s1021_s20, %s1017_s19  ;;  %p37_p9 = scmp.eq.s32.totalorder %s1025_s21, 0 }
  0x13   : > { %p42_p10 = scmp.ne.s32.totalorder %s1017_s19, %s1013_s18  ;;  %p150_p13 = scmp.eq.s32.totalorder %s1100_s25, 1 }
  0x14   : > { %s1130_s15 = scalar_select %p27_p7, %s1021_s20, %s29_s14  }
  0x15   : > { %p1132_p11 = por %p37_p9, %p36_p8  ;;  %p1138_p12 = por %p43_p1, %p42_p10 }
  0x16   : > { %p156_p0 = scmp.eq.s32.totalorder %s733_s11, 1  ;;  %p792_p2 = scmp.lt.s32.totalorder %s1025_s21, 2 }
  0x17   : > { %s210_s22 = sand.u32 1, %s1021_s20   ;;  %p1145_p4 = por %p150_p13, %p36_p8 }
  0x18   : > { %p1149_p6 = por %p156_p0, %p42_p10  ;;  %s738_s27 = sshll.u32 %s210_s22, 3 }
  0x19   : > { %s739_s28 = sshll.u32 %s1025_s21, 3  ;;  %s214_s7 = scalar_lea.vmem [#allocation3], %s738_s27 }
  0x1a   : > { %s218_s6 = scalar_lea.hbm %s1255_s0, %s739_s28  ;;  %s222_s8 = sshll.u32 %s214_s7, 4  ;;  %s223_s8 = int_to_ptr.vmem [resolvable:$true] %s222_s8 }
  0x1b   : > { %s220_s9 = sshll.u32 %s218_s6, 4  ;;  %p1159_p7 = pnand %p792_p2, %p1132_p11  ;;  %s221_s9 = int_to_ptr.hbm [resolvable:$true] %s220_s9 }
  0x1c   : > { %s211_s11 = scalar_lea.sflag [#allocation4], %s210_s22  ;;  %s925_s13 = sshra.s32 %s221_s9, 4  ;;  %s926_s13 = int_to_ptr.hbm [resolvable:$true] %s925_s13 }
  0x1d   : > { %s927_s14 = scalar_lea.hbm %s926_s13, 8  ;;  %p929_p9 = pneg %p1159_p7 }
  0x1e   : > { %p928_p8 = scmp.ne.s32.totalorder %s926_s13, %s927_s14  ;;  %s932_s29 = scalar_lea.hbm %s1255_s0, 16 }
  0x1f   : > { %p933_p11 = scmp.lt.s32.totalorder %s926_s13, %s1255_s0  ;;  %p934_p0 = scmp.lt.s32.totalorder %s932_s29, %s927_s14 }
  0x20   : > { %p930_p10 = pnand %p929_p9, %p928_p8 }
  0x21   : > { %p935_p2 = por %p934_p0, %p933_p11 }
  0x22   : > { %p931_p13 = pneg %p930_p10 }
  0x24   : > { %p936_p5 = pnand %p935_p2, %p931_p13 }
  0x26   : > { %939 = shalt.err (!%p936_p5)
}
  0x27   : > { %785 = dma.hbm_to_vmem [thread:$0]  (!%p1159_p7), %s221_s9, 128, %s223_s8, %s211_s11  }
  0x28   : > { %231 = sbr.rel (%p1105_p3) target bundleno = 975 (0x3cf), region = 40  ;;  %s1176_s22 = sand.u32 (!%p1105_p3), 1, %s1017_s19  }
  0x29   : > { %s741_s6 = sshll.u32 (!%p1105_p3), %s1176_s22, 3  ;;  %s234_s7 = scalar_lea.sflag (!%p1105_p3), [#allocation4], %s1176_s22 }
  0x2a   : > { %s237_s13 = scalar_lea.vmem (!%p1105_p3), [#allocation3], %s741_s6 }
  0x2d   : > { %1000 = dma.done.wait (%p1138_p12), %s234_s7, 128  }
  0x2e   : > { %1002 = vsyncadd (%p1138_p12), %s234_s7, 4294967168 }
  0x2f   : > { %1004 = dma.done.wait (%p43_p1), [#allocation7], 1024  }
  0x30   : > { %1006 = vsyncadd (%p43_p1), [#allocation7], 4294966272  ;;  %v279_v0 = vld [vmem:[#allocation6 + $0x18] sm:$0xff]  ;;  %v278_v1 = vld [vmem:[#allocation6 + $0x10] sm:$0xff]  ;;  %vm288_vm0 = vcmask 261120   ;;  %s1031_s8 = smov 72   ;;  %v313_v17 = vlaneseq }
  0x31   : > { %304 = vmatpush.msra.mxu0 %v279_v0  ;;  %v277_v2 = vld [vmem:[#allocation6 + $0x8] sm:$0xff]  ;;  %v276_v3 = vld [vmem:[#allocation6] sm:$0xff]  ;;  %v275_v4 = vld [vmem:[%s237_s13] sm:$0xff]  ;;  %s1032_s9 = smov 96   ;;  %s1033_s10 = smov 120   ;;  %vm322_vm1 = vcmask 64512  }
  0x32   : > { %v847_v5 = vld [vmem:[%s1257_s2] ss:$0 sm:$0xff]  ;;  %s1034_s11 = smov 88   ;;  %s1035_s14 = smov 112   ;;  %v314_v18 = vshrl.u32 %v313_v17, 7  ;;  %v316_v19 = vand.u32 127, %v313_v17 }
  0x33   : > { %305 = vmatpush.msra.mxu0 %v278_v1  ;;  %s1036_s27 = smov 80   ;;  %s1037_s28 = smov 104   ;;  %v1039_v20 = vmov -1e+30   ;;  %vm455_vm3 = vcmask 130112   ;;  %vm526_vm4 = vcmask 195712  }
  0x34   : > { %s1038_s29 = smov 64   ;;  %vm317_vm2 = vcmp.ge.s32.totalorder %v314_v18, %v316_v19  ;;  %s1040_s30 = smov 56   ;;  %vm597_vm5 = vcmask 261312   ;;  %v848_v17 = vld [vmem:[%s1259_s4] ss:$0 sm:$0xff] }
  0x35   : > { %306 = vmatpush.msra.mxu0 %v277_v2  ;;  %v318_v21 = vsel %vm317_vm2, 0.0, %v1039_v20  ;;  %s1041_s16 = smov 40   ;;  %s1042_s7 = smov 48  }
  0x36   : > { %s1043_s13 = smov 16   ;;  %s1044_s26 = smov 8  }
  0x37   : > { %307 = vmatpush.msra.mxu0 %v276_v3  ;;  %s1045_s17 = smov 24  }
  0x38   : > { %745 = vmatmul.msk.f32.vlgmr.msra.gmra.mxu0 %vm288_vm0, %v275_v4 }
  0xb5   : > { %v309_v6 = vpop.f32.mrf.mxu0 }
  0xb6   : > { %v310_v7 = vadd.f32 %v847_v5, %v309_v6 }
  0xb8   : > { %530 = vrot.lane.b32.xlu2 %v310_v7, %s1031_s8  ;;  %320 = vrot.lane.b32.xlu0 %v310_v7, %s1032_s9  ;;  %v312_v8 = vmul.f32 0.35355338, %v310_v7  ;;  %s760_s8 = sshll.u32 %s1100_s25, 3  ;;  %s629_s25 = scalar_lea.sflag [#allocation5], %s1176_s22 }
  0xba   : > { %386 = vrot.lane.b32.xlu1 %v312_v8, %s1033_s10 }
  0xc0   : > { %388 = vrot.lane.b32.xlu0 %v310_v7, %s1034_s11  ;;  %457 = vrot.lane.b32.xlu2 %v312_v8, %s1035_s14  ;;  %s639_s11 = scalar_lea.hbm %s1260_s5, %s760_s8 }
  0xc2   : > { %459 = vrot.lane.b32.xlu1 %v310_v7, %s1036_s27 }
  0xc8   : > { %528 = vrot.lane.b32.xlu0 %v312_v8, %s1037_s28  ;;  %s274_s28 = scalar_lea.vmem [#allocation9], %s741_s6  ;;  %s975_s6 = scalar_lea.hbm %s1260_s5, 16 }
  0xd0   : > { %357 = vrot.lane.b32.xlu0 %v310_v7, %s1038_s29  ;;  %s641_s29 = sshll.u32 %s274_s28, 4  ;;  %s642_s29 = int_to_ptr.vmem [resolvable:$true] %s641_s29 }
 0x112   : > { %v531_v9 = vpop.permute.xlu2 %530 }
 0x113   : > { %755 = vmatpush.xpose.msk.msrb.mxu0 %vm322_vm1, %v531_v9 }
 0x11a   : > { %v458_v14 = vpop.permute.xlu2 %457 }
 0x12a   : > { %v321_v10 = vpop.permute.xlu0 %320 }
 0x12b   : > { %746 = vmatpush.xpose.msk.msra.mxu1 %vm322_vm1, %v321_v10  ;;  %v283_v10 = vld [vmem:[#allocation8 + $0x18] sm:$0xff] }
 0x12c   : > { %v387_v11 = vpop.permute.xlu1 %386 }
 0x12e   : > { %747 = vmatmul.msk.f32.vlgmr.msra.gmra.mxu1 %vm322_vm1, %v312_v8 }
 0x132   : > { %v389_v12 = vpop.permute.xlu0 %388 }
 0x133   : > { %749 = vmatpush.xpose.msk.msra.mxu3 %vm322_vm1, %v389_v12  ;;  %v281_v12 = vld [vmem:[#allocation8 + $0x8] sm:$0xff] }
 0x134   : > { %v460_v13 = vpop.permute.xlu1 %459 }
 0x135   : > { %752 = vmatpush.xpose.msk.msrb.mxu1 %vm322_vm1, %v460_v13  ;;  %v280_v13 = vld [vmem:[#allocation8] sm:$0xff] }
 0x136   : > { %750 = vmatmul.msk.f32.vlgmr.msra.gmra.mxu3 %vm322_vm1, %v387_v11  ;;  %v282_v11 = vld [vmem:[#allocation8 + $0x10] sm:$0xff] }
 0x138   : > { %753 = vmatmul.msk.f32.vlgmr.msrb.gmra.mxu1 %vm322_vm1, %v458_v14 }
 0x139   : > { %619 = vmatpush.msra.mxu1 %v283_v10 }
 0x13a   : > { %v529_v15 = vpop.permute.xlu0 %528 }
 0x13b   : > { %756 = vmatmul.msk.f32.vlgmr.msrb.gmra.mxu0 %vm322_vm1, %v529_v15  ;;  %620 = vmatpush.msra.mxu1 %v282_v11 }
 0x13d   : > { %621 = vmatpush.msra.mxu1 %v281_v12 }
 0x13f   : > { %622 = vmatpush.msra.mxu1 %v280_v13 }
 0x142   : > { %v358_v16 = vpop.permute.xlu0 %357 }
 0x143   : > { %378 = vmatpush.msra.mxu2 %v358_v16 }
 0x1ab   : > { %v345_v22 = vpop.f32.mrf.mxu1 }
 0x1ac   : > { %v346_v23 = vadd.f32 %v345_v22, %v318_v21 }
 0x1ae   : > { %v348_v24 = vsel %vm322_vm1, %v346_v23, -inf }
 0x1af   : > { %349 = vmax.xlane.f32.xlu1 %v348_v24 }
 0x1b5   : > { %v482_v25 = vpop.f32.mrf.mxu1 }
 0x1b6   : > { %v483_v26 = vadd.f32 %v482_v25, %v318_v21 }
 0x1b8   : > { %v553_v27 = vpop.f32.mrf.mxu0  ;;  %v485_v28 = vsel %vm322_vm1, %v483_v26, -inf }
 0x1b9   : > { %v554_v29 = vadd.f32 %v553_v27, %v318_v21  ;;  %486 = vmax.xlane.f32.xlu0 %v485_v28  ;;  %v411_v31 = vpop.f32.mrf.mxu3 }
 0x1ba   : > { %v412_v32 = vadd.f32 %v411_v31, %v318_v21 }
 0x1bb   : > { %v556_v30 = vsel %vm322_vm1, %v554_v29, -inf }
 0x1bc   : > { %557 = vmax.xlane.f32.xlu2 %v556_v30  ;;  %v414_v33 = vsel %vm322_vm1, %v412_v32, -inf }
 0x1c4   : > { %415 = vmax.xlane.f32.xlu2 %v414_v33 }
 0x1c8   : > { %423 = vrot.lane.b32.xlu1 %v310_v7, %s1040_s30  ;;  %s643_s30 = sshll.u32 %s639_s11, 4  ;;  %s644_s30 = int_to_ptr.hbm [resolvable:$true] %s643_s30 }
 0x1cd   : > { %565 = vrot.lane.b32.xlu0 %v310_v7, %s1041_s16  ;;  %s969_s16 = sshra.s32 %s644_s30, 4  ;;  %s970_s16 = int_to_ptr.hbm [resolvable:$true] %s969_s16 }
 0x1ce   : > { %p976_p12 = scmp.lt.s32.totalorder %s970_s16, %s1260_s5 }
 0x1dc   : > { %494 = vrot.lane.b32.xlu2 %v310_v7, %s1042_s7  ;;  %s971_s7 = scalar_lea.hbm %s970_s16, 8 }
 0x1dd   : > { %p972_p1 = scmp.ne.s32.totalorder %s970_s16, %s971_s7  ;;  %p977_p7 = scmp.lt.s32.totalorder %s975_s6, %s971_s7 }
 0x1df   : > { %p973_p3 = pnand %p972_p1, %p1145_p4  ;;  %p978_p8 = por %p977_p7, %p976_p12 }
 0x1e1   : > { %p974_p5 = pneg %p973_p3 }
 0x1e3   : > { %p979_p9 = pnand %p978_p8, %p974_p5 }
 0x222   : > { %v350_v34 = vpop.xlane.xlu1 %349 }
 0x223   : > { %v351_v35 = vsub.f32 %v346_v23, %v350_v34 }
 0x225   : > { %v352_v36 = vmul.f32 1.442695, %v351_v35 }
 0x227   : > { %849 = vpow2.f32 %v352_v36 }
 0x22c   : > { %v487_v37 = vpop.xlane.xlu0 %486 }
 0x22d   : > { %v850_v38 = vpop.eup %849  ;;  %v488_v39 = vsub.f32 %v483_v26, %v487_v37 }
 0x22e   : > { %748 = vmatmul.msk.f32.vlgmr.msra.gmra.mxu2 %vm322_vm1, %v850_v38  ;;  %v354_v56 = vsel %vm322_vm1, %v850_v38, 0.0 }
 0x22f   : > { %v489_v40 = vmul.f32 1.442695, %v488_v39  ;;  %v558_v41 = vpop.xlane.xlu2 %557 }
 0x230   : > { %v559_v42 = vsub.f32 %v554_v29, %v558_v41 }
 0x231   : > { %851 = vpow2.f32 %v489_v40 }
 0x232   : > { %v560_v43 = vmul.f32 1.442695, %v559_v42 }
 0x234   : > { %853 = vpow2.f32 %v560_v43 }
 0x237   : > { %v852_v44 = vpop.eup %851  ;;  %v416_v45 = vpop.xlane.xlu2 %415 }
 0x238   : > { %v417_v46 = vsub.f32 %v412_v32, %v416_v45  ;;  %v491_v47 = vsel %vm322_vm1, %v852_v44, 0.0 }
 0x239   : > { %492 = vadd.xlane.f32.xlu2 %v491_v47 }
 0x23a   : > { %v854_v48 = vpop.eup %853  ;;  %v418_v49 = vmul.f32 1.442695, %v417_v46  ;;  %v424_v50 = vpop.permute.xlu1 %423 }
 0x23b   : > { %444 = vmatpush.msrb.mxu2 %v424_v50  ;;  %v562_v51 = vsel %vm322_vm1, %v854_v48, 0.0 }
 0x23c   : > { %855 = vpow2.f32 %v418_v49  ;;  %563 = vadd.xlane.f32.xlu0 %v562_v51 }
 0x23f   : > { %v495_v52 = vpop.permute.xlu2 %494  ;;  %v566_v53 = vpop.permute.xlu0 %565 }
 0x240   : > { %515 = vmatpush.msrb.mxu3 %v495_v52  ;;  %586 = vmatpush.msra.mxu2 %v566_v53 }
 0x241   : > { %754 = vmatmul.msk.f32.vlgmr.msrb.gmra.mxu3 %vm322_vm1, %v852_v44 }
 0x242   : > { %v856_v54 = vpop.eup %855 }
 0x243   : > { %751 = vmatmul.msk.f32.vlgmr.msrb.gmra.mxu2 %vm322_vm1, %v856_v54  ;;  %v420_v55 = vsel %vm322_vm1, %v856_v54, 0.0 }
 0x244   : > { %421 = vadd.xlane.f32.xlu1 %v420_v55 }
 0x24b   : > { %757 = vmatmul.msk.f32.vlgmr.msra.gmra.mxu2 %vm322_vm1, %v854_v48 }
 0x24c   : > { %355 = vadd.xlane.f32.xlu1 %v354_v56 }
 0x2ac   : > { %v493_v58 = vpop.xlane.xlu2 %492 }
 0x2ad   : > { %857 = vrcp.f32 %v493_v58 }
 0x2af   : > { %v564_v0 = vpop.xlane.xlu0 %563 }
 0x2b1   : > { %v380_v59 = vpop.f32.mrf.mxu2 }
 0x2b3   : > { %v858_v61 = vpop.eup %857 }
 0x2b7   : > { %v422_v57 = vpop.xlane.xlu1 %421 }
 0x2b8   : > { %859 = vrcp.f32 %v422_v57 }
 0x2be   : > { %v860_v63 = vpop.eup %859 }
 0x2bf   : > { %v356_v60 = vpop.xlane.xlu1 %355 }
 0x2c0   : > { %861 = vrcp.f32 %v356_v60 }
 0x2c1   : > { %863 = vrcp.f32 %v564_v0 }
 0x2c4   : > { %v517_v62 = vpop.f32.mrf.mxu3 }
 0x2c5   : > { %v521_v1 = vmul.f32 %v858_v61, %v517_v62 }
 0x2c6   : > { %v862_v2 = vpop.eup %861  ;;  %v446_v3 = vpop.f32.mrf.mxu2 }
 0x2c7   : > { %v384_v4 = vmul.f32 %v862_v2, %v380_v59  ;;  %v450_v5 = vmul.f32 %v860_v63, %v446_v3  ;;  %523 = vrot.lane.b32.xlu1 %v521_v1, %s1043_s13  ;;  %v864_v6 = vpop.eup %863 }
 0x2c9   : > { %385 = vst.msk [vmem:[#allocation2] sm:$0xff] %vm322_vm1, %v384_v4  ;;  %452 = vrot.lane.b32.xlu2 %v450_v5, %s1044_s26 }
 0x2ce   : > { %v588_v7 = vpop.f32.mrf.mxu2 }
 0x2cf   : > { %v592_v8 = vmul.f32 %v864_v6, %v588_v7 }
 0x2d1   : > { %594 = vrot.lane.b32.xlu0 %v592_v8, %s1045_s17 }
 0x323   : > { %v453_v9 = vpop.permute.xlu2 %452 }
 0x324   : > { %456 = vst.msk [vmem:[#allocation2] sm:$0xff] %vm455_vm3, %v453_v9 }
 0x339   : > { %v524_v14 = vpop.permute.xlu1 %523 }
 0x33a   : > { %527 = vst.msk [vmem:[#allocation2] sm:$0xff] %vm526_vm4, %v524_v14 }
 0x343   : > { %v595_v15 = vpop.permute.xlu0 %594 }
 0x344   : > { %598 = vst.msk [vmem:[#allocation2] sm:$0xff] %vm597_vm5, %v595_v15 }
 0x34b   : > { %v599_v16 = vld [vmem:[#allocation2] sm:$0xff] }
 0x34c   : > { %758 = vmatmul.msk.f32.vlgmr.msra.gmra.mxu1 %vm288_vm0, %v599_v16 }
 0x3c9   : > { %v624_v18 = vpop.f32.mrf.mxu1 }
 0x3ca   : > { %v625_v19 = vadd.f32 %v848_v17, %v624_v18 }
 0x3cc   : > { %627 = vst.msk [vmem:[%s274_s28] sm:$0xff] %vm288_vm0, %v625_v19 }
 0x3cd   : > { %982 = shalt.err (!%p979_p9)
}
 0x3ce   : > { %773 = dma.vmem_to_hbm [thread:$0]  (%p1145_p4), %s642_s29, 128, %s644_s30, %s629_s25  }
 0x3cf PF: > { %s655_s22 = sand.u32 1, %s1013_s18   ;;  %p1267_p10 = scmp.ge.s32.totalorder %s1025_s21, 2 }
 0x3d0   : > { %s656_s9 = scalar_lea.sflag [#allocation5], %s655_s22 }
 0x3d1   : > { %p787_p13 = pnand %p1267_p10, %p1149_p6 }
 0x3d3   : > { %p788_p11 = pneg %p787_p13 }
 0x3d5   : > { %1008 = dma.done.wait (%p788_p11), %s656_s9, 128  }
 0x3d6   : > { %1010 = vsyncadd (%p788_p11), %s656_s9, 4294967168  ;;  %p19_p0 = scmp.ge.s32.totalorder %s1119_s12, 4   ;;  %s1268_s18 = smov %s1017_s19 }
 0x3d7   : > { %s1269_s19 = smov %s1021_s20  ;;  %s1270_s20 = smov %s1130_s15 }
 0x3d8   : > { %s1271_s21 = smov %s1119_s12  ;;  %21 = sbr.rel (!%p19_p0) target bundleno = 6 (0x6), region = 93 }
 0x3dd   :  { %662 = vsyncpa [#allocation4], 1 }
 0x3de   :  { %664 = vsyncpa [#allocation4 + $0x1], 1 }
 0x3df   :  { %665 = vsyncpa [#allocation7], 1 }
 0x3e0   :  { %666 = vsyncpa [#allocation5], 1 }
 0x3e1   :  { %668 = vsyncpa [#allocation5 + $0x1], 1 }

</bundles_post_ra>
